<compile_context>
chip_gen: v7x
topology: tpu7x:2x2x1
jax: 0.10.0
libtpu: 0.0.40
codegen_flags: <defaults>
</compile_context>

<pallas_src>
import jax
import jax.numpy as jnp
from jax.experimental import pallas as pl
from jax.experimental.pallas import tpu as pltpu


def _mlp5_kernel(x_ref,
                 w1_ref, b1_ref,
                 w2_ref, b2_ref,
                 w3_ref, b3_ref,
                 w4_ref, b4_ref,
                 w5_ref, b5_ref,
                 o_ref):
    # Cast x to bf16 in-kernel (f32 in HBM/VMEM; cast rides VPU slack).
    x = x_ref[...].astype(jnp.bfloat16)

    # Layer 1: tiny-K (input_size) matmul, bf16 x bf16 -> f32 accumulation.
    h = jnp.dot(x, w1_ref[...],
                preferred_element_type=jnp.float32) + b1_ref[...]
    h = jnp.maximum(h, 0.0)

    # Layers 2-4: 512x512 bf16 matmuls, f32 accumulation, f32 bias + ReLU.
    for w_ref, b_ref in ((w2_ref, b2_ref), (w3_ref, b3_ref), (w4_ref, b4_ref)):
        h = jnp.dot(h.astype(jnp.bfloat16), w_ref[...],
                    preferred_element_type=jnp.float32) + b_ref[...]
        h = jnp.maximum(h, 0.0)

    # Layer 5 (512 -> N_pad lanes); forward() applies ReLU to the last layer too.
    h = jnp.dot(h.astype(jnp.bfloat16), w5_ref[...],
                preferred_element_type=jnp.float32) + b5_ref[...]
    h = jnp.maximum(h, 0.0)

    o_ref[...] = h.astype(o_ref.dtype)


def _round_up(a, m):
    return (a + m - 1) // m * m


def prepare_params(params, *, lane=128):
    """One-time parameter prep: cast weights to bf16 / biases to f32 and
    lane-pad the final layer's output dimension to a multiple of 128.

    `params` holds w1..w5 with shape (in, out) — the transpose of nn.Linear's
    (out, in) — and b1..b5 with shape (1, out)."""
    input_size = params["w1"].shape[0]
    num_class = params["w5"].shape[1]
    n_pad = _round_up(max(num_class, lane), lane)

    prepped = {"input_size": input_size, "num_class": num_class, "n_pad": n_pad}
    for i in range(1, 6):
        w = params[f"w{i}"].astype(jnp.bfloat16)
        b = params[f"b{i}"].astype(jnp.float32)
        if i == 5 and n_pad != num_class:
            w = jnp.pad(w, ((0, 0), (0, n_pad - num_class)))
            b = jnp.pad(b, ((0, 0), (0, n_pad - num_class)))
        prepped[f"w{i}"] = w
        prepped[f"b{i}"] = b
    return prepped


def detector_mlp5_forward(x, prepped, *, tb=512):
    """x: any shape whose flattening gives [-1, input_size].
    prepped: output of prepare_params()."""
    input_size = prepped["input_size"]
    num_class = prepped["num_class"]
    n_pad = prepped["n_pad"]
    hidden = prepped["w2"].shape[0]

    x2d = x.reshape(-1, input_size).astype(jnp.float32)
    B = x2d.shape[0]

    # Batch tile:
    #  * tiny batches (<=128 rows): one tile, rounded up to 16 (bf16 sublane
    #    packing on v5e; also a multiple of 8).
    #  * otherwise: at least 2 tiles so both v7x TensorCores get work, capped
    #    at `tb` (MXU M-tile saturation), rounded to 128.
    if B <= 128:
        TB = _round_up(B, 16)
    else:
        TB = min(tb, _round_up((B + 1) // 2, 128))
    B_pad = _round_up(B, TB)
    if B_pad != B:
        x2d = jnp.pad(x2d, ((0, B_pad - B), (0, 0)))
    nb = B_pad // TB

    ws = [prepped[f"w{i}"] for i in range(1, 6)]
    bs = [prepped[f"b{i}"] for i in range(1, 6)]

    operands = [x2d]
    in_specs = [pl.BlockSpec((TB, input_size), lambda i: (i, 0))]
    for w, b in zip(ws, bs):
        operands += [w, b]
        # Full-array blocks with a fixed block index: weights/biases stay
        # resident in VMEM across all batch tiles.
        in_specs.append(pl.BlockSpec(w.shape, lambda i: (0, 0)))
        in_specs.append(pl.BlockSpec(b.shape, lambda i: (0, 0)))

    flops_per_row = 2 * (input_size * hidden + 3 * hidden * hidden
                         + hidden * n_pad)
    bytes_accessed = (x2d.size * 4
                      + sum(w.size * 2 for w in ws)
                      + sum(b.size * 4 for b in bs)
                      + B_pad * n_pad * 4)

    out = pl.pallas_call(
        _mlp5_kernel,
        out_shape=jax.ShapeDtypeStruct((B_pad, n_pad), jnp.float32),
        grid=(nb,),
        in_specs=in_specs,
        out_specs=pl.BlockSpec((TB, n_pad), lambda i: (i, 0)),
        compiler_params=pltpu.CompilerParams(
            dimension_semantics=("parallel",),   # megacore sharding on v7x
            vmem_limit_bytes=32 << 20,           # fits v7x 64 MiB with headroom
        ),
        cost_estimate=pl.CostEstimate(
            flops=flops_per_row * B_pad,
            transcendentals=0,
            bytes_accessed=int(bytes_accessed)),
    )(*operands)

    return out[:B, :num_class]


def init_params(key, input_size=10, num_class=2):
    """Deterministic synthetic init (PyTorch-like uniform fan-in scaling).
    Weights stored (in, out) = transpose of nn.Linear's (out, in)."""
    dims = [(input_size, 512), (512, 512), (512, 512), (512, 512),
            (512, num_class)]
    params = {}
    keys = jax.random.split(key, 2 * len(dims))
    for i, (fan_in, fan_out) in enumerate(dims):
        bound = 1.0 / jnp.sqrt(jnp.float32(fan_in))
        w = jax.random.uniform(keys[2 * i], (fan_in, fan_out),
                               minval=-bound, maxval=bound, dtype=jnp.float32)
        b = jax.random.uniform(keys[2 * i + 1], (1, fan_out),
                               minval=-bound, maxval=bound, dtype=jnp.float32)
        params[f"w{i + 1}"] = w
        params[f"b{i + 1}"] = b
    return params


if __name__ == "__main__":
    key = jax.random.PRNGKey(0)
    kx, kp = jax.random.split(key)

    # Small input: (2, 4, 10) -> view(-1, 10) -> (8, 10)
    x = jax.random.normal(kx, (2, 4, 10), dtype=jnp.float32)
    params = init_params(kp, input_size=10, num_class=2)
    prepped = prepare_params(params)

    out = detector_mlp5_forward(x, prepped)
    out = jax.block_until_ready(out)

    # Pure-JAX reference with the same bf16-compute / f32-accumulate recipe.
    def ref(xv, p):
        h = xv.reshape(-1, 10)
        for i in range(1, 6):
            h = jnp.dot(h.astype(jnp.bfloat16),
                        p[f"w{i}"].astype(jnp.bfloat16),
                        preferred_element_type=jnp.float32) + p[f"b{i}"]
            h = jnp.maximum(h, 0.0)
        return h

    expected = ref(x, params)
    assert out.shape == (8, 2), out.shape
    assert jnp.allclose(out, expected, atol=2e-2, rtol=2e-2), "mismatch vs reference"

    print("KERNEL_OK")
</pallas_src>

<mosaic_0001>
module attributes {stable_mosaic.version = 11 : i64} {
  func.func @_mlp5_kernel(%arg0: i32, %arg1: memref<16x10xf32, #tpu.memory_space<vmem>>, %arg2: memref<10x512xbf16, #tpu.memory_space<vmem>>, %arg3: memref<1x512xf32, #tpu.memory_space<vmem>>, %arg4: memref<512x512xbf16, #tpu.memory_space<vmem>>, %arg5: memref<1x512xf32, #tpu.memory_space<vmem>>, %arg6: memref<512x512xbf16, #tpu.memory_space<vmem>>, %arg7: memref<1x512xf32, #tpu.memory_space<vmem>>, %arg8: memref<512x512xbf16, #tpu.memory_space<vmem>>, %arg9: memref<1x512xf32, #tpu.memory_space<vmem>>, %arg10: memref<512x128xbf16, #tpu.memory_space<vmem>>, %arg11: memref<1x128xf32, #tpu.memory_space<vmem>>, %arg12: memref<16x128xf32, #tpu.memory_space<vmem>>) attributes {dimension_semantics = [#tpu.dimension_semantics<parallel>], iteration_bounds = array<i64: 1>, scalar_prefetch = 0 : i64, scratch_operands = 0 : i64, tpu.core_type = #tpu.core_type<tc>, window_params = [{transform_indices = @transform_0, window_bounds = array<i64: 16, 10>}, {pipeline_mode = #tpu.pipeline_mode<synchronous>, transform_indices = @transform_1, window_bounds = array<i64: 10, 512>}, {pipeline_mode = #tpu.pipeline_mode<synchronous>, transform_indices = @transform_2, window_bounds = array<i64: 1, 512>}, {pipeline_mode = #tpu.pipeline_mode<synchronous>, transform_indices = @transform_3, window_bounds = array<i64: 512, 512>}, {pipeline_mode = #tpu.pipeline_mode<synchronous>, transform_indices = @transform_4, window_bounds = array<i64: 1, 512>}, {pipeline_mode = #tpu.pipeline_mode<synchronous>, transform_indices = @transform_5, window_bounds = array<i64: 512, 512>}, {pipeline_mode = #tpu.pipeline_mode<synchronous>, transform_indices = @transform_6, window_bounds = array<i64: 1, 512>}, {pipeline_mode = #tpu.pipeline_mode<synchronous>, transform_indices = @transform_7, window_bounds = array<i64: 512, 512>}, {pipeline_mode = #tpu.pipeline_mode<synchronous>, transform_indices = @transform_8, window_bounds = array<i64: 1, 512>}, {pipeline_mode = #tpu.pipeline_mode<synchronous>, transform_indices = @transform_9, window_bounds = array<i64: 512, 128>}, {pipeline_mode = #tpu.pipeline_mode<synchronous>, transform_indices = @transform_10, window_bounds = array<i64: 1, 128>}, {transform_indices = @transform_11, window_bounds = array<i64: 16, 128>}]} {
    %c0 = arith.constant 0 : index
    %c0_0 = arith.constant 0 : index
    %0 = vector.load %arg1[%c0, %c0_0] : memref<16x10xf32, #tpu.memory_space<vmem>>, vector<16x10xf32>
    %1 = arith.truncf %0 : vector<16x10xf32> to vector<16x10xbf16>
    %c0_1 = arith.constant 0 : index
    %c0_2 = arith.constant 0 : index
    %2 = vector.load %arg2[%c0_1, %c0_2] : memref<10x512xbf16, #tpu.memory_space<vmem>>, vector<10x512xbf16>
    %cst = arith.constant dense<0.000000e+00> : vector<16x512xf32>
    %3 = tpu.matmul %1, %2, %cst {dimension_numbers = #tpu.dot_dimension_numbers<[1], [0], [0], [1], [0, 0, 1, 1], [], []>} : vector<16x10xbf16>, vector<10x512xbf16>, vector<16x512xf32> -> vector<16x512xf32>
    %c0_3 = arith.constant 0 : index
    %c0_4 = arith.constant 0 : index
    %4 = vector.load %arg3[%c0_3, %c0_4] : memref<1x512xf32, #tpu.memory_space<vmem>>, vector<1x512xf32>
    %5 = vector.broadcast %4 : vector<1x512xf32> to vector<16x512xf32>
    %6 = arith.addf %3, %5 : vector<16x512xf32>
    %cst_5 = arith.constant 0.000000e+00 : f32
    %7 = vector.broadcast %cst_5 : f32 to vector<16x512xf32>
    %8 = arith.maximumf %6, %7 : vector<16x512xf32>
    %9 = arith.truncf %8 : vector<16x512xf32> to vector<16x512xbf16>
    %c0_6 = arith.constant 0 : index
    %c0_7 = arith.constant 0 : index
    %10 = vector.load %arg4[%c0_6, %c0_7] : memref<512x512xbf16, #tpu.memory_space<vmem>>, vector<512x512xbf16>
    %cst_8 = arith.constant dense<0.000000e+00> : vector<16x512xf32>
    %11 = tpu.matmul %9, %10, %cst_8 {dimension_numbers = #tpu.dot_dimension_numbers<[1], [0], [0], [1], [0, 0, 1, 1], [], []>} : vector<16x512xbf16>, vector<512x512xbf16>, vector<16x512xf32> -> vector<16x512xf32>
    %c0_9 = arith.constant 0 : index
    %c0_10 = arith.constant 0 : index
    %12 = vector.load %arg5[%c0_9, %c0_10] : memref<1x512xf32, #tpu.memory_space<vmem>>, vector<1x512xf32>
    %13 = vector.broadcast %12 : vector<1x512xf32> to vector<16x512xf32>
    %14 = arith.addf %11, %13 : vector<16x512xf32>
    %cst_11 = arith.constant 0.000000e+00 : f32
    %15 = vector.broadcast %cst_11 : f32 to vector<16x512xf32>
    %16 = arith.maximumf %14, %15 : vector<16x512xf32>
    %17 = arith.truncf %16 : vector<16x512xf32> to vector<16x512xbf16>
    %c0_12 = arith.constant 0 : index
    %c0_13 = arith.constant 0 : index
    %18 = vector.load %arg6[%c0_12, %c0_13] : memref<512x512xbf16, #tpu.memory_space<vmem>>, vector<512x512xbf16>
    %cst_14 = arith.constant dense<0.000000e+00> : vector<16x512xf32>
    %19 = tpu.matmul %17, %18, %cst_14 {dimension_numbers = #tpu.dot_dimension_numbers<[1], [0], [0], [1], [0, 0, 1, 1], [], []>} : vector<16x512xbf16>, vector<512x512xbf16>, vector<16x512xf32> -> vector<16x512xf32>
    %c0_15 = arith.constant 0 : index
    %c0_16 = arith.constant 0 : index
    %20 = vector.load %arg7[%c0_15, %c0_16] : memref<1x512xf32, #tpu.memory_space<vmem>>, vector<1x512xf32>
    %21 = vector.broadcast %20 : vector<1x512xf32> to vector<16x512xf32>
    %22 = arith.addf %19, %21 : vector<16x512xf32>
    %cst_17 = arith.constant 0.000000e+00 : f32
    %23 = vector.broadcast %cst_17 : f32 to vector<16x512xf32>
    %24 = arith.maximumf %22, %23 : vector<16x512xf32>
    %25 = arith.truncf %24 : vector<16x512xf32> to vector<16x512xbf16>
    %c0_18 = arith.constant 0 : index
    %c0_19 = arith.constant 0 : index
    %26 = vector.load %arg8[%c0_18, %c0_19] : memref<512x512xbf16, #tpu.memory_space<vmem>>, vector<512x512xbf16>
    %cst_20 = arith.constant dense<0.000000e+00> : vector<16x512xf32>
    %27 = tpu.matmul %25, %26, %cst_20 {dimension_numbers = #tpu.dot_dimension_numbers<[1], [0], [0], [1], [0, 0, 1, 1], [], []>} : vector<16x512xbf16>, vector<512x512xbf16>, vector<16x512xf32> -> vector<16x512xf32>
    %c0_21 = arith.constant 0 : index
    %c0_22 = arith.constant 0 : index
    %28 = vector.load %arg9[%c0_21, %c0_22] : memref<1x512xf32, #tpu.memory_space<vmem>>, vector<1x512xf32>
    %29 = vector.broadcast %28 : vector<1x512xf32> to vector<16x512xf32>
    %30 = arith.addf %27, %29 : vector<16x512xf32>
    %cst_23 = arith.constant 0.000000e+00 : f32
    %31 = vector.broadcast %cst_23 : f32 to vector<16x512xf32>
    %32 = arith.maximumf %30, %31 : vector<16x512xf32>
    %33 = arith.truncf %32 : vector<16x512xf32> to vector<16x512xbf16>
    %c0_24 = arith.constant 0 : index
    %c0_25 = arith.constant 0 : index
    %34 = vector.load %arg10[%c0_24, %c0_25] : memref<512x128xbf16, #tpu.memory_space<vmem>>, vector<512x128xbf16>
    %cst_26 = arith.constant dense<0.000000e+00> : vector<16x128xf32>
    %35 = tpu.matmul %33, %34, %cst_26 {dimension_numbers = #tpu.dot_dimension_numbers<[1], [0], [0], [1], [0, 0, 1, 1], [], []>} : vector<16x512xbf16>, vector<512x128xbf16>, vector<16x128xf32> -> vector<16x128xf32>
    %c0_27 = arith.constant 0 : index
    %c0_28 = arith.constant 0 : index
    %36 = vector.load %arg11[%c0_27, %c0_28] : memref<1x128xf32, #tpu.memory_space<vmem>>, vector<1x128xf32>
    %37 = vector.broadcast %36 : vector<1x128xf32> to vector<16x128xf32>
    %38 = arith.addf %35, %37 : vector<16x128xf32>
    %cst_29 = arith.constant 0.000000e+00 : f32
    %39 = vector.broadcast %cst_29 : f32 to vector<16x128xf32>
    %40 = arith.maximumf %38, %39 : vector<16x128xf32>
    %c0_30 = arith.constant 0 : index
    %c0_31 = arith.constant 0 : index
    %41 = vector.load %arg12[%c0_30, %c0_31] : memref<16x128xf32, #tpu.memory_space<vmem>>, vector<16x128xf32>
    tpu.vector_store %arg12[%c0_30, %c0_31], %40 {strides = array<i32>} : memref<16x128xf32, #tpu.memory_space<vmem>>, vector<16x128xf32>,
    return
  }
  func.func @transform_0(%arg0: i32) -> (i32, i32) {
    %c0_i32 = arith.constant 0 : i32
    %c0_i32_0 = arith.constant 0 : i32
    return %arg0, %c0_i32 : i32, i32
  }
  func.func @transform_1(%arg0: i32) -> (i32, i32) {
    %c0_i32 = arith.constant 0 : i32
    %c0_i32_0 = arith.constant 0 : i32
    %c0_i32_1 = arith.constant 0 : i32
    return %c0_i32, %c0_i32_0 : i32, i32
  }
  func.func @transform_2(%arg0: i32) -> (i32, i32) {
    %c0_i32 = arith.constant 0 : i32
    %c0_i32_0 = arith.constant 0 : i32
    %c0_i32_1 = arith.constant 0 : i32
    return %c0_i32, %c0_i32_0 : i32, i32
  }
  func.func @transform_3(%arg0: i32) -> (i32, i32) {
    %c0_i32 = arith.constant 0 : i32
    %c0_i32_0 = arith.constant 0 : i32
    %c0_i32_1 = arith.constant 0 : i32
    return %c0_i32, %c0_i32_0 : i32, i32
  }
  func.func @transform_4(%arg0: i32) -> (i32, i32) {
    %c0_i32 = arith.constant 0 : i32
    %c0_i32_0 = arith.constant 0 : i32
    %c0_i32_1 = arith.constant 0 : i32
    return %c0_i32, %c0_i32_0 : i32, i32
  }
  func.func @transform_5(%arg0: i32) -> (i32, i32) {
    %c0_i32 = arith.constant 0 : i32
    %c0_i32_0 = arith.constant 0 : i32
    %c0_i32_1 = arith.constant 0 : i32
    return %c0_i32, %c0_i32_0 : i32, i32
  }
  func.func @transform_6(%arg0: i32) -> (i32, i32) {
    %c0_i32 = arith.constant 0 : i32
    %c0_i32_0 = arith.constant 0 : i32
    %c0_i32_1 = arith.constant 0 : i32
    return %c0_i32, %c0_i32_0 : i32, i32
  }
  func.func @transform_7(%arg0: i32) -> (i32, i32) {
    %c0_i32 = arith.constant 0 : i32
    %c0_i32_0 = arith.constant 0 : i32
    %c0_i32_1 = arith.constant 0 : i32
    return %c0_i32, %c0_i32_0 : i32, i32
  }
  func.func @transform_8(%arg0: i32) -> (i32, i32) {
    %c0_i32 = arith.constant 0 : i32
    %c0_i32_0 = arith.constant 0 : i32
    %c0_i32_1 = arith.constant 0 : i32
    return %c0_i32, %c0_i32_0 : i32, i32
  }
  func.func @transform_9(%arg0: i32) -> (i32, i32) {
    %c0_i32 = arith.constant 0 : i32
    %c0_i32_0 = arith.constant 0 : i32
    %c0_i32_1 = arith.constant 0 : i32
    return %c0_i32, %c0_i32_0 : i32, i32
  }
  func.func @transform_10(%arg0: i32) -> (i32, i32) {
    %c0_i32 = arith.constant 0 : i32
    %c0_i32_0 = arith.constant 0 : i32
    %c0_i32_1 = arith.constant 0 : i32
    return %c0_i32, %c0_i32_0 : i32, i32
  }
  func.func @transform_11(%arg0: i32) -> (i32, i32) {
    %c0_i32 = arith.constant 0 : i32
    %c0_i32_0 = arith.constant 0 : i32
    return %arg0, %c0_i32 : i32, i32
  }
}

</mosaic_0001>

<bundles_post_ra>
// kernel: tpu_custom_call.1
= control target key start
LH: loop header
LB: loop body
LE: loop exit
PB: predicated region body
PF: predicated region fallthrough
CT: control target
= control target key end

     0   :  { %16 = vsyncpa [#allocation3], 0  ;;  %s5109_s0 = inlined_call_operand.hbm [shape: f32[16,10], index: 0, kind: input, shape index: {}]   ;;  %s5110_s1 = inlined_call_operand.hbm [shape: bf16[10,512], index: 1, kind: input, shape index: {}]   ;;  %s5111_s2 = inlined_call_operand.vmem [shape: f32[1,512], index: 2, kind: input, shape index: {}]   ;;  %s5112_s3 = inlined_call_operand.hbm [shape: bf16[512,512], index: 3, kind: input, shape index: {}]   ;;  %s5113_s4 = inlined_call_operand.vmem [shape: f32[1,512], index: 4, kind: input, shape index: {}]   ;;  %s5114_s5 = inlined_call_operand.hbm [shape: bf16[512,512], index: 5, kind: input, shape index: {}]   ;;  %s5115_s6 = inlined_call_operand.vmem [shape: f32[1,512], index: 6, kind: input, shape index: {}]   ;;  %s5116_s7 = inlined_call_operand.hbm [shape: bf16[512,512], index: 7, kind: input, shape index: {}]   ;;  %s5117_s8 = inlined_call_operand.vmem [shape: f32[1,512], index: 8, kind: input, shape index: {}]   ;;  %s5118_s9 = inlined_call_operand.hbm [shape: bf16[512,128], index: 9, kind: input, shape index: {}]   ;;  %s5119_s10 = inlined_call_operand.vmem [shape: f32[1,128], index: 10, kind: input, shape index: {}]   ;;  %s5120_s11 = inlined_call_operand.hbm [shape: f32[16,128], index: 11, kind: output, shape index: {}]  }
   0x1   :  { %17 = vsyncpa [#allocation6], 0 }
   0x2   :  { %18 = vsyncpa [#allocation9], 0 }
   0x3   :  { %19 = vsyncpa [#allocation12], 0 }
   0x4   :  { %20 = vsyncpa [#allocation4], 0  ;;  %s4882_s17 = smov [#allocation5]   ;;  %s4718_s21 = scalar_lea.hbm %s5110_s1, 512 }
   0x5   :  { %s38_s18 = sshll.u32 %s4882_s17, 4  ;;  %p4719_p0 = scmp.ne.s32.totalorder %s5110_s1, %s4718_s21  ;;  %s39_s18 = int_to_ptr.vmem [resolvable:$true] %s38_s18 }
   0x6   :  { %p4722_p1 = scmp.lt.u32.totalorder %s4718_s21, %s5110_s1 }
   0x8   :  { %p4724_p2 = pnand %p4722_p1, %p4719_p0 }
   0xa   :  { %4727 = shalt.err (!%p4724_p2)
}
   0xb   :  { %s4728_s26 = scalar_lea.vmem %s39_s18, 512  ;;  %p4733_p4 = scmp.lt.s32.totalorder %s39_s18, %s39_s18 }
   0xc   :  { %p4729_p3 = scmp.ne.s32.totalorder %s39_s18, %s4728_s26  ;;  %p4734_p5 = scmp.lt.s32.totalorder %s4728_s26, %s4728_s26 }
   0xe   :  { %p4735_p6 = por %p4734_p5, %p4733_p4 }
  0x10   :  { %p4736_p7 = pnand %p4735_p6, %p4729_p3 }
  0x12   :  { %4739 = shalt.err (!%p4736_p7)
}
  0x13   :  { %s4883_s27 = smov 256   ;;  %s4884_s28 = smov 16  }
  0x14   :  { %44 = dma.hbm_to_vmem [thread:$0]  %s5110_s1, 512, %s39_s18, [#allocation6], %s4883_s27, %s4883_s27, %s4884_s28  }
  0x15   :  { %s4885_s12 = smov [#allocation8]   ;;  %s4886_s14 = smov [#allocation2]  }
  0x16   :  { %s66_s13 = sshll.u32 %s4885_s12, 4  ;;  %s26_s15 = sshll.u32 %s4886_s14, 4  ;;  %s67_s13 = int_to_ptr.vmem [resolvable:$true] %s66_s13  ;;  %s27_s15 = int_to_ptr.vmem [resolvable:$true] %s26_s15 }
  0x17   :  { %s4740_s19 = scalar_lea.hbm %s5114_s5, 16384 }
  0x18   :  { %p4741_p8 = scmp.ne.s32.totalorder %s5114_s5, %s4740_s19  ;;  %p4744_p9 = scmp.lt.u32.totalorder %s4740_s19, %s5114_s5 }
  0x1a   :  { %p4746_p10 = pnand %p4744_p9, %p4741_p8 }
  0x1c   :  { %4749 = shalt.err (!%p4746_p10)
}
  0x1d   :  { %s4750_s1 = scalar_lea.vmem %s67_s13, 16384  ;;  %p4755_p12 = scmp.lt.s32.totalorder %s67_s13, %s67_s13 }
  0x1e   :  { %p4751_p11 = scmp.ne.s32.totalorder %s67_s13, %s4750_s1  ;;  %p4756_p13 = scmp.lt.s32.totalorder %s4750_s1, %s4750_s1 }
  0x20   :  { %p4757_p0 = por %p4756_p13, %p4755_p12 }
  0x22   :  { %p4758_p1 = pnand %p4757_p0, %p4751_p11 }
  0x24   :  { %4761 = shalt.err (!%p4758_p1)
}
  0x25   :  { %72 = dma.hbm_to_vmem [thread:$0]  %s5114_s5, 16384, %s67_s13, [#allocation9], %s4883_s27, %s4883_s27, %s4884_s28  }
  0x26   :  { %s4762_s29 = scalar_lea.hbm %s5109_s0, 256 }
  0x27   :  { %p4763_p2 = scmp.ne.s32.totalorder %s5109_s0, %s4762_s29  ;;  %p4766_p3 = scmp.lt.u32.totalorder %s4762_s29, %s5109_s0 }
  0x29   :  { %p4768_p4 = pnand %p4766_p3, %p4763_p2 }
  0x2b   :  { %4771 = shalt.err (!%p4768_p4)
}
  0x2c   :  { %s4772_s17 = scalar_lea.vmem %s27_s15, 256  ;;  %p4777_p6 = scmp.lt.s32.totalorder %s27_s15, %s27_s15 }
  0x2d   :  { %p4773_p5 = scmp.ne.s32.totalorder %s27_s15, %s4772_s17  ;;  %p4778_p7 = scmp.lt.s32.totalorder %s4772_s17, %s4772_s17 }
  0x2f   :  { %p4779_p8 = por %p4778_p7, %p4777_p6 }
  0x31   :  { %p4780_p9 = pnand %p4779_p8, %p4773_p5 }
  0x33   :  { %4783 = shalt.err (!%p4780_p9)
}
  0x34   :  { %s4887_s5 = smov 128   ;;  %s4888_s13 = smov 8  }
  0x35   :  { %32 = dma.hbm_to_vmem [thread:$0]  %s5109_s0, 256, %s27_s15, [#allocation3], %s4887_s5, %s4887_s5, %s4888_s13  }
  0x36   :  { %s4889_s21 = smov [#allocation7]   ;;  %s4890_s23 = smov [#allocation10]  }
  0x37   :  { %s52_s22 = sshll.u32 %s4889_s21, 4  ;;  %s80_s1 = sshll.u32 %s4890_s23, 4  ;;  %s53_s22 = int_to_ptr.vmem [resolvable:$true] %s52_s22  ;;  %s81_s1 = int_to_ptr.vmem [resolvable:$true] %s80_s1 }
  0x38   :  { %s4784_s25 = scalar_lea.hbm %s5112_s3, 16384 }
  0x39   :  { %p4785_p10 = scmp.ne.s32.totalorder %s5112_s3, %s4784_s25  ;;  %p4788_p11 = scmp.lt.u32.totalorder %s4784_s25, %s5112_s3 }
  0x3b   :  { %p4790_p12 = pnand %p4788_p11, %p4785_p10 }
  0x3d   :  { %4793 = shalt.err (!%p4790_p12)
}
  0x3e   :  { %s4794_s0 = scalar_lea.vmem %s53_s22, 16384  ;;  %p4799_p0 = scmp.lt.s32.totalorder %s53_s22, %s53_s22 }
  0x3f   :  { %p4795_p13 = scmp.ne.s32.totalorder %s53_s22, %s4794_s0  ;;  %p4800_p1 = scmp.lt.s32.totalorder %s4794_s0, %s4794_s0 }
  0x41   :  { %p4801_p2 = por %p4800_p1, %p4799_p0 }
  0x43   :  { %p4802_p3 = pnand %p4801_p2, %p4795_p13 }
  0x45   :  { %4805 = shalt.err (!%p4802_p3)
}
  0x46   :  { %58 = dma.hbm_to_vmem [thread:$0]  %s5112_s3, 16384, %s53_s22, [#allocation6], %s4883_s27, %s4883_s27, %s4884_s28  }
  0x47   :  { %s4806_s19 = scalar_lea.hbm %s5116_s7, 16384 }
  0x48   :  { %p4807_p4 = scmp.ne.s32.totalorder %s5116_s7, %s4806_s19  ;;  %p4810_p5 = scmp.lt.u32.totalorder %s4806_s19, %s5116_s7 }
  0x4a   :  { %p4812_p6 = pnand %p4810_p5, %p4807_p4 }
  0x4c   :  { %4815 = shalt.err (!%p4812_p6)
}
  0x4d   :  { %s4816_s24 = scalar_lea.vmem %s81_s1, 16384  ;;  %p4821_p8 = scmp.lt.s32.totalorder %s81_s1, %s81_s1 }
  0x4e   :  { %p4817_p7 = scmp.ne.s32.totalorder %s81_s1, %s4816_s24  ;;  %p4822_p9 = scmp.lt.s32.totalorder %s4816_s24, %s4816_s24 }
  0x50   :  { %p4823_p10 = por %p4822_p9, %p4821_p8 }
  0x52   :  { %p4824_p11 = pnand %p4823_p10, %p4817_p7 }
  0x54   :  { %4827 = shalt.err (!%p4824_p11)
}
  0x55   :  { %86 = dma.hbm_to_vmem [thread:$0]  %s5116_s7, 16384, %s81_s1, [#allocation9], %s4883_s27, %s4883_s27, %s4884_s28  }
  0x56   :  { %s4891_s25 = smov [#allocation11]   ;;  %s4828_s12 = scalar_lea.hbm %s5118_s9, 4096 }
  0x57   :  { %s94_s26 = sshll.u32 %s4891_s25, 4  ;;  %p4829_p12 = scmp.ne.s32.totalorder %s5118_s9, %s4828_s12  ;;  %s95_s26 = int_to_ptr.vmem [resolvable:$true] %s94_s26 }
  0x58   :  { %p4832_p13 = scmp.lt.u32.totalorder %s4828_s12, %s5118_s9 }
  0x5a   :  { %p4834_p0 = pnand %p4832_p13, %p4829_p12 }
  0x5c   :  { %4837 = shalt.err (!%p4834_p0)
}
  0x5d   :  { %s4838_s17 = scalar_lea.vmem %s95_s26, 4096  ;;  %p4843_p2 = scmp.lt.s32.totalorder %s95_s26, %s95_s26 }
  0x5e   :  { %p4839_p1 = scmp.ne.s32.totalorder %s95_s26, %s4838_s17  ;;  %p4844_p3 = scmp.lt.s32.totalorder %s4838_s17, %s4838_s17 }
  0x60   :  { %p4845_p4 = por %p4844_p3, %p4843_p2 }
  0x62   :  { %p4846_p5 = pnand %p4845_p4, %p4839_p1 }
  0x64   :  { %4849 = shalt.err (!%p4846_p5)
}
  0x65   :  { %s4892_s7 = smov 64   ;;  %s4893_s27 = smov 4  }
  0x66   :  { %100 = dma.hbm_to_vmem [thread:$0]  %s5118_s9, 4096, %s95_s26, [#allocation12], %s4892_s7, %s4892_s7, %s4893_s27  }
  0x67   :  { %4872 = dma.done.wait [#allocation3], 256  }
  0x68   :  { %4873 = vsyncadd [#allocation3], 4294967040 }
  0x69   :  { %4874 = dma.done.wait [#allocation6], 16896  }
  0x6a   :  { %4875 = vsyncadd [#allocation6], 4294950400 }
  0x6b   :  { %4876 = dma.done.wait [#allocation9], 32768  }
  0x6c   :  { %4877 = vsyncadd [#allocation9], 4294934528 }
  0x6d   :  { %4878 = dma.done.wait [#allocation12], 4096  }
  0x6e   :  { %4879 = vsyncadd [#allocation12], 4294963200  ;;  %v4894_v0 = vmov 0   ;;  %vm171_vm0 = vcmask 1044480   ;;  %v122_v3 = vld [vmem:[#allocation2] sm:$0xff]  ;;  %v123_v4 = vld [vmem:[#allocation2 + $0x8] sm:$0xff] }
  0x6f   :  { %216 = vmatprep.mubr.bf16.mxu0 %v4894_v0  ;;  %259 = vmatprep.mubr.bf16.mxu1 %v4894_v0  ;;  %v4104_v1 = vld [vmem:[#allocation5 + $0x4] ss:$16 sps:$4 sm:$0x1f]   ;;  %v4106_v2 = vld [vmem:[#allocation5] ss:$16 sps:$4 sm:$0x1f]   ;;  %v124_v7 = vpack.c.bf16 %v123_v4, %v122_v3 }
  0x70   :  { %3577 = vmatprep.subr.msk.bf16.mxu0 %vm171_vm0, %v4104_v1  ;;  %v4107_v5 = vld [vmem:[#allocation5 + $0xc] ss:$16 sps:$4 sm:$0x1f]   ;;  %v173_v6 = vsel %vm171_vm0, %v4106_v2, 0  ;;  %vm167_vm1 = vcmask 80896   ;;  %s4895_s24 = smov [#allocation13]  }
  0x71   :  { %v4109_v8 = vld [vmem:[#allocation5 + $0x8] ss:$16 sps:$4 sm:$0x1f]   ;;  %185 = vmatpush1.bf16.msra.mxu0 %v173_v6  ;;  %3579 = vmatprep.subr.msk.bf16.mxu1 %vm171_vm0, %v4107_v5  ;;  %v4110_v9 = vld [vmem:[#allocation7] ss:$16 sps:$4 sm:$0xff]   ;;  %s3558_s3 = sshll.u32 %s4895_s24, 4  ;;  %s3559_s3 = int_to_ptr.vmem [resolvable:$true] %s3558_s3 }
  0x72   :  { %v4112_v10 = vld [vmem:[#allocation7 + $0x4] ss:$16 sps:$4 sm:$0xff]   ;;  %v179_v11 = vsel %vm171_vm0, %v4109_v8, 0  ;;  %v4115_v12 = vld [vmem:[#allocation7 + $0xc] ss:$16 sps:$4 sm:$0xff]   ;;  %p4855_p7 = scmp.lt.s32.totalorder %s3559_s3, %s3559_s3 }
  0x73   :  { %228 = vmatpush1.bf16.msra.mxu1 %v179_v11  ;;  %1072 = vmatprep.subr.bf16.mxu0 %v4112_v10  ;;  %v4113_v13 = vld [vmem:[#allocation7 + $0x8] ss:$16 sps:$4 sm:$0xff]   ;;  %v4118_v14 = vld [vmem:[#allocation7 + $0x24] ss:$16 sps:$4 sm:$0xff]   ;;  %v4116_v15 = vld [vmem:[#allocation7 + $0x20] ss:$16 sps:$4 sm:$0xff]  }
  0x74   :  { %3578 = vmatmul.mubr.msk.bf16.vlgmr.msra.gmra.mrb[0].mxu0 %vm167_vm1, %v124_v7  ;;  %1158 = vmatprep.subr.bf16.mxu1 %v4115_v12  ;;  %v4121_v16 = vld [vmem:[#allocation7 + $0x2c] ss:$16 sps:$4 sm:$0xff]   ;;  %v4124_v17 = vld [vmem:[#allocation7 + $0x44] ss:$16 sps:$4 sm:$0xff]   ;;  %v4119_v18 = vld [vmem:[#allocation7 + $0x28] ss:$16 sps:$4 sm:$0xff]   ;;  %v131_v12 = vlaneseq }
  0x75   :  { %1073 = vmatpush1.bf16.msra.mxu0 %v4110_v9  ;;  %v4127_v19 = vld [vmem:[#allocation7 + $0x4c] ss:$16 sps:$4 sm:$0xff]   ;;  %v4122_v20 = vld [vmem:[#allocation7 + $0x40] ss:$16 sps:$4 sm:$0xff]   ;;  %v4130_v21 = vld [vmem:[#allocation7 + $0x64] ss:$16 sps:$4 sm:$0xff]  }
  0x76   :  { %3580 = vmatmul.mubr.msk.bf16.vlgmr.msra.gmra.mrb[0].mxu1 %vm167_vm1, %v124_v7  ;;  %1074 = vmatprep.subr.bf16.mxu0 %v4118_v14  ;;  %v4125_v22 = vld [vmem:[#allocation7 + $0x48] ss:$16 sps:$4 sm:$0xff]   ;;  %v4133_v23 = vld [vmem:[#allocation7 + $0x6c] ss:$16 sps:$4 sm:$0xff]   ;;  %v4128_v24 = vld [vmem:[#allocation7 + $0x60] ss:$16 sps:$4 sm:$0xff]  }
  0x77   :  { %1159 = vmatpush1.bf16.msra.mxu1 %v4113_v13  ;;  %v4136_v25 = vld [vmem:[#allocation7 + $0x84] ss:$16 sps:$4 sm:$0xff]   ;;  %v4131_v26 = vld [vmem:[#allocation7 + $0x68] ss:$16 sps:$4 sm:$0xff]   ;;  %v4139_v27 = vld [vmem:[#allocation7 + $0x8c] ss:$16 sps:$4 sm:$0xff]  }
  0x78   :  { %1160 = vmatprep.subr.bf16.mxu1 %v4121_v16  ;;  %v4134_v28 = vld [vmem:[#allocation7 + $0x80] ss:$16 sps:$4 sm:$0xff]   ;;  %v4142_v29 = vld [vmem:[#allocation7 + $0xa4] ss:$16 sps:$4 sm:$0xff]   ;;  %v4137_v30 = vld [vmem:[#allocation7 + $0x88] ss:$16 sps:$4 sm:$0xff]  }
  0x79   :  { %1075 = vmatpush1.bf16.msra.mxu0 %v4116_v15  ;;  %v4145_v31 = vld [vmem:[#allocation7 + $0xac] ss:$16 sps:$4 sm:$0xff]   ;;  %v4140_v32 = vld [vmem:[#allocation7 + $0xa0] ss:$16 sps:$4 sm:$0xff]   ;;  %v4148_v33 = vld [vmem:[#allocation7 + $0xc4] ss:$16 sps:$4 sm:$0xff]  }
  0x7a   :  { %1076 = vmatprep.subr.bf16.mxu0 %v4124_v17  ;;  %v4143_v34 = vld [vmem:[#allocation7 + $0xa8] ss:$16 sps:$4 sm:$0xff]   ;;  %v4151_v35 = vld [vmem:[#allocation7 + $0xcc] ss:$16 sps:$4 sm:$0xff]   ;;  %v4146_v36 = vld [vmem:[#allocation7 + $0xc0] ss:$16 sps:$4 sm:$0xff]  }
  0x7b   :  { %1161 = vmatpush1.bf16.msra.mxu1 %v4119_v18  ;;  %v4154_v37 = vld [vmem:[#allocation7 + $0xe4] ss:$16 sps:$4 sm:$0xff]   ;;  %v4149_v38 = vld [vmem:[#allocation7 + $0xc8] ss:$16 sps:$4 sm:$0xff]   ;;  %v4157_v39 = vld [vmem:[#allocation7 + $0xec] ss:$16 sps:$4 sm:$0xff]  }
  0x7c   :  { %1162 = vmatprep.subr.bf16.mxu1 %v4127_v19  ;;  %v4152_v40 = vld [vmem:[#allocation7 + $0xe0] ss:$16 sps:$4 sm:$0xff]   ;;  %v4160_v41 = vld [vmem:[#allocation7 + $0x104] ss:$16 sps:$4 sm:$0xff]   ;;  %v4155_v42 = vld [vmem:[#allocation7 + $0xe8] ss:$16 sps:$4 sm:$0xff]  }
  0x7d   :  { %1077 = vmatpush1.bf16.msra.mxu0 %v4122_v20  ;;  %v4163_v43 = vld [vmem:[#allocation7 + $0x10c] ss:$16 sps:$4 sm:$0xff]   ;;  %v4158_v44 = vld [vmem:[#allocation7 + $0x100] ss:$16 sps:$4 sm:$0xff]   ;;  %v4166_v45 = vld [vmem:[#allocation7 + $0x124] ss:$16 sps:$4 sm:$0xff]  }
  0x7e   :  { %1078 = vmatprep.subr.bf16.mxu0 %v4130_v21  ;;  %v4161_v46 = vld [vmem:[#allocation7 + $0x108] ss:$16 sps:$4 sm:$0xff]   ;;  %v4169_v47 = vld [vmem:[#allocation7 + $0x12c] ss:$16 sps:$4 sm:$0xff]   ;;  %v4164_v48 = vld [vmem:[#allocation7 + $0x120] ss:$16 sps:$4 sm:$0xff]  }
  0x7f   :  { %1163 = vmatpush1.bf16.msra.mxu1 %v4125_v22  ;;  %v4167_v49 = vld [vmem:[#allocation7 + $0x128] ss:$16 sps:$4 sm:$0xff]   ;;  %v4172_v50 = vld [vmem:[#allocation7 + $0x144] ss:$16 sps:$4 sm:$0xff]   ;;  %v4175_v51 = vld [vmem:[#allocation7 + $0x14c] ss:$16 sps:$4 sm:$0xff]  }
  0x80   :  { %1164 = vmatprep.subr.bf16.mxu1 %v4133_v23  ;;  %v4170_v52 = vld [vmem:[#allocation7 + $0x140] ss:$16 sps:$4 sm:$0xff]   ;;  %v4178_v53 = vld [vmem:[#allocation7 + $0x164] ss:$16 sps:$4 sm:$0xff]   ;;  %v4173_v54 = vld [vmem:[#allocation7 + $0x148] ss:$16 sps:$4 sm:$0xff]  }
  0x81   :  { %1079 = vmatpush1.bf16.msra.mxu0 %v4128_v24  ;;  %v4181_v55 = vld [vmem:[#allocation7 + $0x16c] ss:$16 sps:$4 sm:$0xff]   ;;  %v4176_v56 = vld [vmem:[#allocation7 + $0x160] ss:$16 sps:$4 sm:$0xff]   ;;  %v4184_v57 = vld [vmem:[#allocation7 + $0x184] ss:$16 sps:$4 sm:$0xff]  }
  0x82   :  { %1080 = vmatprep.subr.bf16.mxu0 %v4136_v25  ;;  %v4179_v58 = vld [vmem:[#allocation7 + $0x168] ss:$16 sps:$4 sm:$0xff]   ;;  %v4187_v59 = vld [vmem:[#allocation7 + $0x18c] ss:$16 sps:$4 sm:$0xff]   ;;  %v4182_v60 = vld [vmem:[#allocation7 + $0x180] ss:$16 sps:$4 sm:$0xff]  }
  0x83   :  { %1165 = vmatpush1.bf16.msra.mxu1 %v4131_v26  ;;  %v4190_v61 = vld [vmem:[#allocation7 + $0x1a4] ss:$16 sps:$4 sm:$0xff]   ;;  %v4185_v62 = vld [vmem:[#allocation7 + $0x188] ss:$16 sps:$4 sm:$0xff]   ;;  %v4193_v63 = vld [vmem:[#allocation7 + $0x1ac] ss:$16 sps:$4 sm:$0xff]  }
  0x84   :  { %1166 = vmatprep.subr.bf16.mxu1 %v4139_v27  ;;  %v4188_v0 = vld [vmem:[#allocation7 + $0x1a0] ss:$16 sps:$4 sm:$0xff]   ;;  %v4191_v1 = vld [vmem:[#allocation7 + $0x1a8] ss:$16 sps:$4 sm:$0xff]   ;;  %v4196_v2 = vld [vmem:[#allocation7 + $0x1c4] ss:$16 sps:$4 sm:$0xff]  }
  0x85   :  { %1081 = vmatpush1.bf16.msra.mxu0 %v4134_v28  ;;  %v4199_v3 = vld [vmem:[#allocation7 + $0x1cc] ss:$16 sps:$4 sm:$0xff]   ;;  %v4194_v4 = vld [vmem:[#allocation7 + $0x1c0] ss:$16 sps:$4 sm:$0xff]   ;;  %v4197_v5 = vld [vmem:[#allocation7 + $0x1c8] ss:$16 sps:$4 sm:$0xff]  }
  0x86   :  { %1082 = vmatprep.subr.bf16.mxu0 %v4142_v29  ;;  %v4202_v6 = vld [vmem:[#allocation7 + $0x1e4] ss:$16 sps:$4 sm:$0xff]   ;;  %v4205_v7 = vld [vmem:[#allocation7 + $0x1ec] ss:$16 sps:$4 sm:$0xff]   ;;  %v4200_v8 = vld [vmem:[#allocation7 + $0x1e0] ss:$16 sps:$4 sm:$0xff]  }
  0x87   :  { %1167 = vmatpush1.bf16.msra.mxu1 %v4137_v30  ;;  %v4203_v9 = vld [vmem:[#allocation7 + $0x1e8] ss:$16 sps:$4 sm:$0xff]   ;;  %v4208_v10 = vld [vmem:[#allocation7 + $0x204] ss:$16 sps:$4 sm:$0xff]   ;;  %v4211_v11 = vld [vmem:[#allocation7 + $0x20c] ss:$16 sps:$4 sm:$0xff]  }
  0x88   :  { %1168 = vmatprep.subr.bf16.mxu1 %v4145_v31  ;;  %v132_v13 = vshrl.u32 %v131_v12, 7  ;;  %v129_v14 = vld [vmem:[%s5111_s2] sm:$0xf]  ;;  %v4245_v12 = vld [vmem:[#allocation7 + $0x2c8] ss:$16 sps:$4 sm:$0xff]  }
  0x89   :  { %1083 = vmatpush1.bf16.msra.mxu0 %v4140_v32 }
  0x8a   :  { %1084 = vmatprep.subr.bf16.mxu0 %v4148_v33  ;;  %v5046_v15 = vsub.s32 0, %v132_v13  ;;  %v5048_v16 = vsub.s32 1, %v132_v13  ;;  %v5050_v17 = vsub.s32 2, %v132_v13  ;;  %v5052_v18 = vsub.s32 3, %v132_v13  ;;  %v4250_v13 = vld [vmem:[#allocation7 + $0x2e4] ss:$16 sps:$4 sm:$0xff]  }
  0x8b   :  { %1169 = vmatpush1.bf16.msra.mxu1 %v4143_v34 }
  0x8c   :  { %1170 = vmatprep.subr.bf16.mxu1 %v4151_v35  ;;  %v134_v19 = vrot.slane %v129_v14, %v5046_v15  ;;  %v138_v20 = vrot.slane %v129_v14, %v5048_v16  ;;  %v142_v21 = vrot.slane %v129_v14, %v5050_v17  ;;  %v146_v23 = vrot.slane %v129_v14, %v5052_v18  ;;  %v4253_v14 = vld [vmem:[#allocation7 + $0x2ec] ss:$16 sps:$4 sm:$0xff]  }
  0x8d   :  { %1085 = vmatpush1.bf16.msra.mxu0 %v4146_v36 }
  0x8e   :  { %1086 = vmatprep.subr.bf16.mxu0 %v4154_v37 }
  0x8f   :  { %1171 = vmatpush1.bf16.msra.mxu1 %v4149_v38 }
  0x90   :  { %1172 = vmatprep.subr.bf16.mxu1 %v4157_v39 }
  0x91   :  { %1087 = vmatpush1.bf16.msra.mxu0 %v4152_v40 }
  0x92   :  { %1088 = vmatprep.subr.bf16.mxu0 %v4160_v41 }
  0x93   :  { %1173 = vmatpush1.bf16.msra.mxu1 %v4155_v42 }
  0x94   :  { %1174 = vmatprep.subr.bf16.mxu1 %v4163_v43 }
  0x95   :  { %1089 = vmatpush1.bf16.msra.mxu0 %v4158_v44 }
  0x96   :  { %1090 = vmatprep.subr.bf16.mxu0 %v4166_v45 }
  0x97   :  { %1175 = vmatpush1.bf16.msra.mxu1 %v4161_v46 }
  0x98   :  { %1176 = vmatprep.subr.bf16.mxu1 %v4169_v47 }
  0x99   :  { %1091 = vmatpush1.bf16.msra.mxu0 %v4164_v48  ;;  %v4206_v48 = vld [vmem:[#allocation7 + $0x200] ss:$16 sps:$4 sm:$0xff]  }
  0x9a   :  { %1092 = vmatprep.subr.bf16.mxu0 %v4172_v50 }
  0x9b   :  { %1177 = vmatpush1.bf16.msra.mxu1 %v4167_v49  ;;  %v4209_v49 = vld [vmem:[#allocation7 + $0x208] ss:$16 sps:$4 sm:$0xff]  }
  0x9c   :  { %1178 = vmatprep.subr.bf16.mxu1 %v4175_v51  ;;  %v4214_v51 = vld [vmem:[#allocation7 + $0x224] ss:$16 sps:$4 sm:$0xff]  }
  0x9d   :  { %1093 = vmatpush1.bf16.msra.mxu0 %v4170_v52  ;;  %v4217_v52 = vld [vmem:[#allocation7 + $0x22c] ss:$16 sps:$4 sm:$0xff]  }
  0x9e   :  { %1094 = vmatprep.subr.bf16.mxu0 %v4178_v53 }
  0x9f   :  { %1179 = vmatpush1.bf16.msra.mxu1 %v4173_v54 }
  0xa0   :  { %1180 = vmatprep.subr.bf16.mxu1 %v4181_v55  ;;  %v4212_v55 = vld [vmem:[#allocation7 + $0x220] ss:$16 sps:$4 sm:$0xff]  }
  0xa1   :  { %1095 = vmatpush1.bf16.msra.mxu0 %v4176_v56  ;;  %v4215_v56 = vld [vmem:[#allocation7 + $0x228] ss:$16 sps:$4 sm:$0xff]  }
  0xa2   :  { %1096 = vmatprep.subr.bf16.mxu0 %v4184_v57  ;;  %v4220_v57 = vld [vmem:[#allocation7 + $0x244] ss:$16 sps:$4 sm:$0xff]  }
  0xa3   :  { %1181 = vmatpush1.bf16.msra.mxu1 %v4179_v58  ;;  %v4223_v58 = vld [vmem:[#allocation7 + $0x24c] ss:$16 sps:$4 sm:$0xff]  }
  0xa4   :  { %1182 = vmatprep.subr.bf16.mxu1 %v4187_v59  ;;  %v4218_v59 = vld [vmem:[#allocation7 + $0x240] ss:$16 sps:$4 sm:$0xff]  }
  0xa5   :  { %1097 = vmatpush1.bf16.msra.mxu0 %v4182_v60  ;;  %v4221_v60 = vld [vmem:[#allocation7 + $0x248] ss:$16 sps:$4 sm:$0xff]  }
  0xa6   :  { %1098 = vmatprep.subr.bf16.mxu0 %v4190_v61  ;;  %v4226_v61 = vld [vmem:[#allocation7 + $0x264] ss:$16 sps:$4 sm:$0xff]  }
  0xa7   :  { %1183 = vmatpush1.bf16.msra.mxu1 %v4185_v62  ;;  %v4229_v62 = vld [vmem:[#allocation7 + $0x26c] ss:$16 sps:$4 sm:$0xff]  }
  0xa8   :  { %1184 = vmatprep.subr.bf16.mxu1 %v4193_v63  ;;  %v4224_v63 = vld [vmem:[#allocation7 + $0x260] ss:$16 sps:$4 sm:$0xff]  }
  0xa9   :  { %1099 = vmatpush1.bf16.msra.mxu0 %v4188_v0  ;;  %v4227_v0 = vld [vmem:[#allocation7 + $0x268] ss:$16 sps:$4 sm:$0xff]  }
  0xaa   :  { %1100 = vmatprep.subr.bf16.mxu0 %v4196_v2  ;;  %v4235_v2 = vld [vmem:[#allocation7 + $0x28c] ss:$16 sps:$4 sm:$0xff]  }
  0xab   :  { %1185 = vmatpush1.bf16.msra.mxu1 %v4191_v1  ;;  %v4232_v1 = vld [vmem:[#allocation7 + $0x284] ss:$16 sps:$4 sm:$0xff]  }
  0xac   :  { %1186 = vmatprep.subr.bf16.mxu1 %v4199_v3  ;;  %v4230_v3 = vld [vmem:[#allocation7 + $0x280] ss:$16 sps:$4 sm:$0xff]  }
  0xad   :  { %1101 = vmatpush1.bf16.msra.mxu0 %v4194_v4  ;;  %v4233_v4 = vld [vmem:[#allocation7 + $0x288] ss:$16 sps:$4 sm:$0xff]  }
  0xae   :  { %1102 = vmatprep.subr.bf16.mxu0 %v4202_v6  ;;  %v4241_v6 = vld [vmem:[#allocation7 + $0x2ac] ss:$16 sps:$4 sm:$0xff]  }
  0xaf   :  { %1187 = vmatpush1.bf16.msra.mxu1 %v4197_v5  ;;  %v4238_v5 = vld [vmem:[#allocation7 + $0x2a4] ss:$16 sps:$4 sm:$0xff]  }
  0xb0   :  { %1188 = vmatprep.subr.bf16.mxu1 %v4205_v7  ;;  %v4236_v7 = vld [vmem:[#allocation7 + $0x2a0] ss:$16 sps:$4 sm:$0xff]  }
  0xb1   :  { %1103 = vmatpush1.bf16.msra.mxu0 %v4200_v8  ;;  %v4239_v8 = vld [vmem:[#allocation7 + $0x2a8] ss:$16 sps:$4 sm:$0xff]  }
  0xb2   :  { %1115 = vmatprep.subr.bf16.mxu0 %v4208_v10  ;;  %v4247_v10 = vld [vmem:[#allocation7 + $0x2cc] ss:$16 sps:$4 sm:$0xff]  }
  0xb3   :  { %1189 = vmatpush1.bf16.msra.mxu1 %v4203_v9  ;;  %v4244_v9 = vld [vmem:[#allocation7 + $0x2c4] ss:$16 sps:$4 sm:$0xff]  }
  0xb4   :  { %1201 = vmatprep.subr.bf16.mxu1 %v4211_v11  ;;  %v4242_v11 = vld [vmem:[#allocation7 + $0x2c0] ss:$16 sps:$4 sm:$0xff]  }
 0x147   :  { %v218_v22 = vpop.f32.mrb[0].mxu0 }
 0x148   :  { %v219_v24 = vadd.f32 %v218_v22, %v134_v19  ;;  %v220_v25 = vpop.f32.mrb[1].mxu0  ;;  %v4259_v22 = vld [vmem:[#allocation7 + $0x30c] ss:$16 sps:$4 sm:$0xff]  }
 0x149   :  { %v221_v26 = vadd.f32 %v220_v25, %v138_v20  ;;  %v222_v27 = vpop.f32.mrb[2].mxu0  ;;  %v261_v28 = vpop.f32.mrb[0].mxu1  ;;  %v4262_v25 = vld [vmem:[#allocation7 + $0x324] ss:$16 sps:$4 sm:$0xff]  }
 0x14a   :  { %v223_v29 = vadd.f32 %v222_v27, %v134_v19  ;;  %v224_v30 = vpop.f32.mrb[3].mxu0  ;;  %v262_v31 = vadd.f32 %v261_v28, %v142_v21  ;;  %v263_v32 = vpop.f32.mrb[1].mxu1  ;;  %v270_v36 = vmax.f32 %v219_v24, 0.0  ;;  %v4248_v19 = vld [vmem:[#allocation7 + $0x2e0] ss:$16 sps:$4 sm:$0xff]  }
 0x14b   :  { %v225_v33 = vadd.f32 %v224_v30, %v138_v20  ;;  %v264_v34 = vadd.f32 %v263_v32, %v146_v23  ;;  %v265_v35 = vpop.f32.mrb[2].mxu1  ;;  %v271_v41 = vmax.f32 %v221_v26, 0.0  ;;  %v4251_v20 = vld [vmem:[#allocation7 + $0x2e8] ss:$16 sps:$4 sm:$0xff]   ;;  %v4265_v26 = vld [vmem:[#allocation7 + $0x32c] ss:$16 sps:$4 sm:$0xff]  }
 0x14c   :  { %v274_v37 = vmax.f32 %v223_v29, 0.0  ;;  %v272_v38 = vmax.f32 %v262_v31, 0.0  ;;  %v266_v39 = vadd.f32 %v265_v35, %v142_v21  ;;  %v267_v40 = vpop.f32.mrb[3].mxu1  ;;  %v4256_v21 = vld [vmem:[#allocation7 + $0x304] ss:$16 sps:$4 sm:$0xff]  }
 0x14d   :  { %v275_v42 = vmax.f32 %v225_v33, 0.0  ;;  %v273_v43 = vmax.f32 %v264_v34, 0.0  ;;  %v268_v44 = vadd.f32 %v267_v40, %v146_v23  ;;  %v4254_v23 = vld [vmem:[#allocation7 + $0x300] ss:$16 sps:$4 sm:$0xff]   ;;  %v4257_v24 = vld [vmem:[#allocation7 + $0x308] ss:$16 sps:$4 sm:$0xff]  }
 0x14e   :  { %v278_v45 = vpack.c.bf16 %v274_v37, %v270_v36  ;;  %v276_v46 = vmax.f32 %v266_v39, 0.0  ;;  %v4260_v27 = vld [vmem:[#allocation7 + $0x320] ss:$16 sps:$4 sm:$0xff]   ;;  %v4263_v28 = vld [vmem:[#allocation7 + $0x328] ss:$16 sps:$4 sm:$0xff]  }
 0x14f   :  { %v279_v47 = vpack.c.bf16 %v275_v42, %v271_v41  ;;  %v277_v50 = vmax.f32 %v268_v44, 0.0  ;;  %v4268_v29 = vld [vmem:[#allocation7 + $0x344] ss:$16 sps:$4 sm:$0xff]   ;;  %v4271_v30 = vld [vmem:[#allocation7 + $0x34c] ss:$16 sps:$4 sm:$0xff]  }
 0x150   :  { %v5058_v53 = vpack.c.bf16 %v276_v46, %v272_v38  ;;  %v4266_v31 = vld [vmem:[#allocation7 + $0x340] ss:$16 sps:$4 sm:$0xff]   ;;  %v4269_v32 = vld [vmem:[#allocation7 + $0x348] ss:$16 sps:$4 sm:$0xff]   ;;  %v4274_v33 = vld [vmem:[#allocation7 + $0x364] ss:$16 sps:$4 sm:$0xff]  }
 0x151   :  { %1104 = vmatprep.mubr.bf16.mxu0 %v279_v47  ;;  %1190 = vmatprep.mubr.bf16.mxu1 %v279_v47  ;;  %v281_v54 = vpack.c.bf16 %v277_v50, %v273_v43  ;;  %v4277_v34 = vld [vmem:[#allocation7 + $0x36c] ss:$16 sps:$4 sm:$0xff]   ;;  %v4272_v35 = vld [vmem:[#allocation7 + $0x360] ss:$16 sps:$4 sm:$0xff]   ;;  %v4275_v36 = vld [vmem:[#allocation7 + $0x368] ss:$16 sps:$4 sm:$0xff]  }
 0x152   :  { %1105 = vmatmul.mubr.bf16.vlgmr.msra.gmra.mrb[4].mxu0 %v278_v45  ;;  %1191 = vmatmul.mubr.bf16.vlgmr.msra.gmra.mrb[4].mxu1 %v278_v45  ;;  %v4280_v37 = vld [vmem:[#allocation7 + $0x384] ss:$16 sps:$4 sm:$0xff]   ;;  %v4283_v38 = vld [vmem:[#allocation7 + $0x38c] ss:$16 sps:$4 sm:$0xff]   ;;  %v4278_v39 = vld [vmem:[#allocation7 + $0x380] ss:$16 sps:$4 sm:$0xff]  }
 0x153   :  { %1116 = vmatpush1.bf16.msra.mxu0 %v4206_v48  ;;  %1202 = vmatpush1.bf16.msra.mxu1 %v4209_v49  ;;  %v4281_v40 = vld [vmem:[#allocation7 + $0x388] ss:$16 sps:$4 sm:$0xff]   ;;  %v4286_v41 = vld [vmem:[#allocation7 + $0x3a4] ss:$16 sps:$4 sm:$0xff]   ;;  %v4289_v42 = vld [vmem:[#allocation7 + $0x3ac] ss:$16 sps:$4 sm:$0xff]  }
 0x154   :  { %1117 = vmatprep.subr.bf16.mxu0 %v4214_v51  ;;  %1203 = vmatprep.subr.bf16.mxu1 %v4217_v52  ;;  %v4284_v43 = vld [vmem:[#allocation7 + $0x3a0] ss:$16 sps:$4 sm:$0xff]   ;;  %v4287_v44 = vld [vmem:[#allocation7 + $0x3a8] ss:$16 sps:$4 sm:$0xff]   ;;  %v4292_v45 = vld [vmem:[#allocation7 + $0x3c4] ss:$16 sps:$4 sm:$0xff]  }
 0x155   :  { %1147 = vmatprep.mubr.bf16.mxu0 %v281_v54  ;;  %1233 = vmatprep.mubr.bf16.mxu1 %v281_v54  ;;  %v4295_v46 = vld [vmem:[#allocation7 + $0x3cc] ss:$16 sps:$4 sm:$0xff]   ;;  %v4290_v47 = vld [vmem:[#allocation7 + $0x3c0] ss:$16 sps:$4 sm:$0xff]   ;;  %v4293_v48 = vld [vmem:[#allocation7 + $0x3c8] ss:$16 sps:$4 sm:$0xff]  }
 0x156   :  { %v4298_v49 = vld [vmem:[#allocation7 + $0x3e4] ss:$16 sps:$4 sm:$0xff]   ;;  %v4301_v50 = vld [vmem:[#allocation7 + $0x3ec] ss:$16 sps:$4 sm:$0xff]   ;;  %v4296_v51 = vld [vmem:[#allocation7 + $0x3e0] ss:$16 sps:$4 sm:$0xff]  }
 0x157   :  { %1118 = vmatpush1.bf16.msra.mxu0 %v4212_v55  ;;  %1204 = vmatpush1.bf16.msra.mxu1 %v4215_v56  ;;  %v4299_v52 = vld [vmem:[#allocation7 + $0x3e8] ss:$16 sps:$4 sm:$0xff]   ;;  %v4304_v54 = vld [vmem:[#allocation8 + $0x4] ss:$16 sps:$4 sm:$0xff]   ;;  %v4307_v55 = vld [vmem:[#allocation8 + $0xc] ss:$16 sps:$4 sm:$0xff]  }
 0x158   :  { %1119 = vmatprep.subr.bf16.mxu0 %v4220_v57  ;;  %1205 = vmatprep.subr.bf16.mxu1 %v4223_v58  ;;  %v4302_v56 = vld [vmem:[#allocation8] ss:$16 sps:$4 sm:$0xff]   ;;  %v4305_v57 = vld [vmem:[#allocation8 + $0x8] ss:$16 sps:$4 sm:$0xff]   ;;  %v4310_v58 = vld [vmem:[#allocation8 + $0x24] ss:$16 sps:$4 sm:$0xff]  }
 0x15b   :  { %1120 = vmatpush1.bf16.msra.mxu0 %v4218_v59  ;;  %1206 = vmatpush1.bf16.msra.mxu1 %v4221_v60  ;;  %v4313_v59 = vld [vmem:[#allocation8 + $0x2c] ss:$16 sps:$4 sm:$0xff]   ;;  %v4308_v60 = vld [vmem:[#allocation8 + $0x20] ss:$16 sps:$4 sm:$0xff]  }
 0x15c   :  { %1121 = vmatprep.subr.bf16.mxu0 %v4226_v61  ;;  %1207 = vmatprep.subr.bf16.mxu1 %v4229_v62  ;;  %v4311_v61 = vld [vmem:[#allocation8 + $0x28] ss:$16 sps:$4 sm:$0xff]   ;;  %v4316_v62 = vld [vmem:[#allocation8 + $0x44] ss:$16 sps:$4 sm:$0xff]  }
 0x15f   :  { %1122 = vmatpush1.bf16.msra.mxu0 %v4224_v63  ;;  %1208 = vmatpush1.bf16.msra.mxu1 %v4227_v0  ;;  %v4319_v63 = vld [vmem:[#allocation8 + $0x4c] ss:$16 sps:$4 sm:$0xff]   ;;  %v4314_v0 = vld [vmem:[#allocation8 + $0x40] ss:$16 sps:$4 sm:$0xff]  }
 0x160   :  { %1123 = vmatprep.subr.bf16.mxu0 %v4232_v1  ;;  %1209 = vmatprep.subr.bf16.mxu1 %v4235_v2  ;;  %v4317_v1 = vld [vmem:[#allocation8 + $0x48] ss:$16 sps:$4 sm:$0xff]   ;;  %v4322_v2 = vld [vmem:[#allocation8 + $0x64] ss:$16 sps:$4 sm:$0xff]  }
 0x163   :  { %1124 = vmatpush1.bf16.msra.mxu0 %v4230_v3  ;;  %1210 = vmatpush1.bf16.msra.mxu1 %v4233_v4  ;;  %v4325_v3 = vld [vmem:[#allocation8 + $0x6c] ss:$16 sps:$4 sm:$0xff]   ;;  %v4320_v4 = vld [vmem:[#allocation8 + $0x60] ss:$16 sps:$4 sm:$0xff]  }
 0x164   :  { %1125 = vmatprep.subr.bf16.mxu0 %v4238_v5  ;;  %1211 = vmatprep.subr.bf16.mxu1 %v4241_v6  ;;  %v4328_v5 = vld [vmem:[#allocation8 + $0x84] ss:$16 sps:$4 sm:$0xff]   ;;  %v4331_v6 = vld [vmem:[#allocation8 + $0x8c] ss:$16 sps:$4 sm:$0xff]  }
 0x167   :  { %1126 = vmatpush1.bf16.msra.mxu0 %v4236_v7  ;;  %1212 = vmatpush1.bf16.msra.mxu1 %v4239_v8  ;;  %v4326_v7 = vld [vmem:[#allocation8 + $0x80] ss:$16 sps:$4 sm:$0xff]   ;;  %v4329_v8 = vld [vmem:[#allocation8 + $0x88] ss:$16 sps:$4 sm:$0xff]  }
 0x168   :  { %1127 = vmatprep.subr.bf16.mxu0 %v4244_v9  ;;  %1213 = vmatprep.subr.bf16.mxu1 %v4247_v10  ;;  %v4334_v9 = vld [vmem:[#allocation8 + $0xa4] ss:$16 sps:$4 sm:$0xff]   ;;  %v4337_v10 = vld [vmem:[#allocation8 + $0xac] ss:$16 sps:$4 sm:$0xff]  }
 0x16b   :  { %1128 = vmatpush1.bf16.msra.mxu0 %v4242_v11  ;;  %1214 = vmatpush1.bf16.msra.mxu1 %v4245_v12  ;;  %v4332_v11 = vld [vmem:[#allocation8 + $0xa0] ss:$16 sps:$4 sm:$0xff]   ;;  %v4335_v12 = vld [vmem:[#allocation8 + $0xa8] ss:$16 sps:$4 sm:$0xff]  }
 0x16c   :  { %1129 = vmatprep.subr.bf16.mxu0 %v4250_v13  ;;  %1215 = vmatprep.subr.bf16.mxu1 %v4253_v14  ;;  %v4340_v13 = vld [vmem:[#allocation8 + $0xc4] ss:$16 sps:$4 sm:$0xff]   ;;  %v4343_v14 = vld [vmem:[#allocation8 + $0xcc] ss:$16 sps:$4 sm:$0xff]  }
 0x16f   :  { %1130 = vmatpush1.bf16.msra.mxu0 %v4248_v19  ;;  %1216 = vmatpush1.bf16.msra.mxu1 %v4251_v20  ;;  %v4338_v19 = vld [vmem:[#allocation8 + $0xc0] ss:$16 sps:$4 sm:$0xff]   ;;  %v4341_v20 = vld [vmem:[#allocation8 + $0xc8] ss:$16 sps:$4 sm:$0xff]  }
 0x170   :  { %1131 = vmatprep.subr.bf16.mxu0 %v4256_v21  ;;  %1217 = vmatprep.subr.bf16.mxu1 %v4259_v22  ;;  %v4346_v21 = vld [vmem:[#allocation8 + $0xe4] ss:$16 sps:$4 sm:$0xff]   ;;  %v4349_v22 = vld [vmem:[#allocation8 + $0xec] ss:$16 sps:$4 sm:$0xff]  }
 0x173   :  { %1132 = vmatpush1.bf16.msra.mxu0 %v4254_v23  ;;  %1218 = vmatpush1.bf16.msra.mxu1 %v4257_v24  ;;  %v4344_v23 = vld [vmem:[#allocation8 + $0xe0] ss:$16 sps:$4 sm:$0xff]   ;;  %v4347_v24 = vld [vmem:[#allocation8 + $0xe8] ss:$16 sps:$4 sm:$0xff]  }
 0x174   :  { %1133 = vmatprep.subr.bf16.mxu0 %v4262_v25  ;;  %1219 = vmatprep.subr.bf16.mxu1 %v4265_v26  ;;  %v4352_v25 = vld [vmem:[#allocation8 + $0x104] ss:$16 sps:$4 sm:$0xff]   ;;  %v4355_v26 = vld [vmem:[#allocation8 + $0x10c] ss:$16 sps:$4 sm:$0xff]  }
 0x177   :  { %1134 = vmatpush1.bf16.msra.mxu0 %v4260_v27  ;;  %1220 = vmatpush1.bf16.msra.mxu1 %v4263_v28  ;;  %v4350_v27 = vld [vmem:[#allocation8 + $0x100] ss:$16 sps:$4 sm:$0xff]   ;;  %v4353_v28 = vld [vmem:[#allocation8 + $0x108] ss:$16 sps:$4 sm:$0xff]  }
 0x178   :  { %1135 = vmatprep.subr.bf16.mxu0 %v4268_v29  ;;  %1221 = vmatprep.subr.bf16.mxu1 %v4271_v30  ;;  %v4358_v29 = vld [vmem:[#allocation8 + $0x124] ss:$16 sps:$4 sm:$0xff]   ;;  %v4361_v30 = vld [vmem:[#allocation8 + $0x12c] ss:$16 sps:$4 sm:$0xff]  }
 0x17b   :  { %1136 = vmatpush1.bf16.msra.mxu0 %v4266_v31  ;;  %1222 = vmatpush1.bf16.msra.mxu1 %v4269_v32  ;;  %v4356_v31 = vld [vmem:[#allocation8 + $0x120] ss:$16 sps:$4 sm:$0xff]   ;;  %v4359_v32 = vld [vmem:[#allocation8 + $0x128] ss:$16 sps:$4 sm:$0xff]  }
 0x17c   :  { %1137 = vmatprep.subr.bf16.mxu0 %v4274_v33  ;;  %1223 = vmatprep.subr.bf16.mxu1 %v4277_v34  ;;  %v4364_v33 = vld [vmem:[#allocation8 + $0x144] ss:$16 sps:$4 sm:$0xff]   ;;  %v4367_v34 = vld [vmem:[#allocation8 + $0x14c] ss:$16 sps:$4 sm:$0xff]  }
 0x17f   :  { %1138 = vmatpush1.bf16.msra.mxu0 %v4272_v35  ;;  %1224 = vmatpush1.bf16.msra.mxu1 %v4275_v36  ;;  %v4362_v35 = vld [vmem:[#allocation8 + $0x140] ss:$16 sps:$4 sm:$0xff]   ;;  %v4365_v36 = vld [vmem:[#allocation8 + $0x148] ss:$16 sps:$4 sm:$0xff]  }
 0x180   :  { %1139 = vmatprep.subr.bf16.mxu0 %v4280_v37  ;;  %1225 = vmatprep.subr.bf16.mxu1 %v4283_v38  ;;  %v4370_v37 = vld [vmem:[#allocation8 + $0x164] ss:$16 sps:$4 sm:$0xff]   ;;  %v4373_v38 = vld [vmem:[#allocation8 + $0x16c] ss:$16 sps:$4 sm:$0xff]  }
 0x183   :  { %1140 = vmatpush1.bf16.msra.mxu0 %v4278_v39  ;;  %1226 = vmatpush1.bf16.msra.mxu1 %v4281_v40  ;;  %v4368_v39 = vld [vmem:[#allocation8 + $0x160] ss:$16 sps:$4 sm:$0xff]   ;;  %v4371_v40 = vld [vmem:[#allocation8 + $0x168] ss:$16 sps:$4 sm:$0xff]  }
 0x184   :  { %1141 = vmatprep.subr.bf16.mxu0 %v4286_v41  ;;  %1227 = vmatprep.subr.bf16.mxu1 %v4289_v42  ;;  %v4376_v41 = vld [vmem:[#allocation8 + $0x184] ss:$16 sps:$4 sm:$0xff]   ;;  %v4379_v42 = vld [vmem:[#allocation8 + $0x18c] ss:$16 sps:$4 sm:$0xff]  }
 0x187   :  { %1142 = vmatpush1.bf16.msra.mxu0 %v4284_v43  ;;  %1228 = vmatpush1.bf16.msra.mxu1 %v4287_v44  ;;  %v4374_v43 = vld [vmem:[#allocation8 + $0x180] ss:$16 sps:$4 sm:$0xff]   ;;  %v4377_v44 = vld [vmem:[#allocation8 + $0x188] ss:$16 sps:$4 sm:$0xff]  }
 0x188   :  { %1143 = vmatprep.subr.bf16.mxu0 %v4292_v45  ;;  %1229 = vmatprep.subr.bf16.mxu1 %v4295_v46  ;;  %v4382_v45 = vld [vmem:[#allocation8 + $0x1a4] ss:$16 sps:$4 sm:$0xff]   ;;  %v4385_v46 = vld [vmem:[#allocation8 + $0x1ac] ss:$16 sps:$4 sm:$0xff]  }
 0x18b   :  { %1144 = vmatpush1.bf16.msra.mxu0 %v4290_v47  ;;  %1230 = vmatpush1.bf16.msra.mxu1 %v4293_v48  ;;  %v4380_v47 = vld [vmem:[#allocation8 + $0x1a0] ss:$16 sps:$4 sm:$0xff]   ;;  %v4383_v48 = vld [vmem:[#allocation8 + $0x1a8] ss:$16 sps:$4 sm:$0xff]  }
 0x18c   :  { %1145 = vmatprep.subr.bf16.mxu0 %v4298_v49  ;;  %1231 = vmatprep.subr.bf16.mxu1 %v4301_v50  ;;  %v4388_v49 = vld [vmem:[#allocation8 + $0x1c4] ss:$16 sps:$4 sm:$0xff]   ;;  %v4391_v50 = vld [vmem:[#allocation8 + $0x1cc] ss:$16 sps:$4 sm:$0xff]  }
 0x18f   :  { %1146 = vmatpush1.bf16.msra.mxu0 %v4296_v51  ;;  %1232 = vmatpush1.bf16.msra.mxu1 %v4299_v52  ;;  %v4386_v51 = vld [vmem:[#allocation8 + $0x1c0] ss:$16 sps:$4 sm:$0xff]   ;;  %v4389_v52 = vld [vmem:[#allocation8 + $0x1c8] ss:$16 sps:$4 sm:$0xff]  }
 0x190   :  { %2046 = vmatprep.subr.bf16.mxu0 %v4304_v54  ;;  %2132 = vmatprep.subr.bf16.mxu1 %v4307_v55  ;;  %v4394_v54 = vld [vmem:[#allocation8 + $0x1e4] ss:$16 sps:$4 sm:$0xff]   ;;  %v4397_v55 = vld [vmem:[#allocation8 + $0x1ec] ss:$16 sps:$4 sm:$0xff]  }
 0x192   :  { %1148 = vmatmul.mubr.bf16.vlgmr.msra.gmra.mrb[4].mxu0 %v5058_v53  ;;  %1234 = vmatmul.mubr.bf16.vlgmr.msra.gmra.mrb[4].mxu1 %v5058_v53  ;;  %v4323_v53 = vld [vmem:[#allocation8 + $0x68] ss:$16 sps:$4 sm:$0xff]  }
 0x193   :  { %2047 = vmatpush1.bf16.msra.mxu0 %v4302_v56  ;;  %2133 = vmatpush1.bf16.msra.mxu1 %v4305_v57  ;;  %v4392_v56 = vld [vmem:[#allocation8 + $0x1e0] ss:$16 sps:$4 sm:$0xff]   ;;  %v4395_v57 = vld [vmem:[#allocation8 + $0x1e8] ss:$16 sps:$4 sm:$0xff]  }
 0x194   :  { %2048 = vmatprep.subr.bf16.mxu0 %v4310_v58  ;;  %2134 = vmatprep.subr.bf16.mxu1 %v4313_v59  ;;  %v4400_v58 = vld [vmem:[#allocation8 + $0x204] ss:$16 sps:$4 sm:$0xff]   ;;  %v4403_v59 = vld [vmem:[#allocation8 + $0x20c] ss:$16 sps:$4 sm:$0xff]  }
 0x197   :  { %2049 = vmatpush1.bf16.msra.mxu0 %v4308_v60  ;;  %2135 = vmatpush1.bf16.msra.mxu1 %v4311_v61  ;;  %v410_v60 = vld [vmem:[%s5113_s4] sm:$0xf] }
 0x198   :  { %2050 = vmatprep.subr.bf16.mxu0 %v4316_v62  ;;  %2136 = vmatprep.subr.bf16.mxu1 %v4319_v63  ;;  %v415_v61 = vrot.slane %v410_v60, %v5046_v15  ;;  %v423_v62 = vrot.slane %v410_v60, %v5050_v17  ;;  %v419_v63 = vrot.slane %v410_v60, %v5048_v16 }
 0x19b   :  { %2051 = vmatpush1.bf16.msra.mxu0 %v4314_v0  ;;  %2137 = vmatpush1.bf16.msra.mxu1 %v4317_v1  ;;  %v427_v0 = vrot.slane %v410_v60, %v5052_v18  ;;  %v4445_v60 = vld [vmem:[#allocation8 + $0x2ec] ss:$16 sps:$4 sm:$0xff]  }
 0x19c   :  { %2052 = vmatprep.subr.bf16.mxu0 %v4322_v2  ;;  %2138 = vmatprep.subr.bf16.mxu1 %v4325_v3 }
 0x19f   :  { %2053 = vmatpush1.bf16.msra.mxu0 %v4320_v4  ;;  %2139 = vmatpush1.bf16.msra.mxu1 %v4323_v53 }
 0x1a0   :  { %2054 = vmatprep.subr.bf16.mxu0 %v4328_v5  ;;  %2140 = vmatprep.subr.bf16.mxu1 %v4331_v6 }
 0x1a3   :  { %2055 = vmatpush1.bf16.msra.mxu0 %v4326_v7  ;;  %2141 = vmatpush1.bf16.msra.mxu1 %v4329_v8 }
 0x1a4   :  { %2056 = vmatprep.subr.bf16.mxu0 %v4334_v9  ;;  %2142 = vmatprep.subr.bf16.mxu1 %v4337_v10 }
 0x1a7   :  { %2057 = vmatpush1.bf16.msra.mxu0 %v4332_v11  ;;  %2143 = vmatpush1.bf16.msra.mxu1 %v4335_v12 }
 0x1a8   :  { %2058 = vmatprep.subr.bf16.mxu0 %v4340_v13  ;;  %2144 = vmatprep.subr.bf16.mxu1 %v4343_v14 }
 0x1ab   :  { %2059 = vmatpush1.bf16.msra.mxu0 %v4338_v19  ;;  %2145 = vmatpush1.bf16.msra.mxu1 %v4341_v20 }
 0x1ac   :  { %2060 = vmatprep.subr.bf16.mxu0 %v4346_v21  ;;  %2146 = vmatprep.subr.bf16.mxu1 %v4349_v22 }
 0x1af   :  { %2061 = vmatpush1.bf16.msra.mxu0 %v4344_v23  ;;  %2147 = vmatpush1.bf16.msra.mxu1 %v4347_v24 }
 0x1b0   :  { %2062 = vmatprep.subr.bf16.mxu0 %v4352_v25  ;;  %2148 = vmatprep.subr.bf16.mxu1 %v4355_v26 }
 0x1b3   :  { %2063 = vmatpush1.bf16.msra.mxu0 %v4350_v27  ;;  %2149 = vmatpush1.bf16.msra.mxu1 %v4353_v28 }
 0x1b4   :  { %2064 = vmatprep.subr.bf16.mxu0 %v4358_v29  ;;  %2150 = vmatprep.subr.bf16.mxu1 %v4361_v30 }
 0x1b7   :  { %2065 = vmatpush1.bf16.msra.mxu0 %v4356_v31  ;;  %2151 = vmatpush1.bf16.msra.mxu1 %v4359_v32  ;;  %v4398_v32 = vld [vmem:[#allocation8 + $0x200] ss:$16 sps:$4 sm:$0xff]  }
 0x1b8   :  { %2066 = vmatprep.subr.bf16.mxu0 %v4364_v33  ;;  %2152 = vmatprep.subr.bf16.mxu1 %v4367_v34  ;;  %v4401_v33 = vld [vmem:[#allocation8 + $0x208] ss:$16 sps:$4 sm:$0xff]   ;;  %v4406_v34 = vld [vmem:[#allocation8 + $0x224] ss:$16 sps:$4 sm:$0xff]  }
 0x1bb   :  { %2067 = vmatpush1.bf16.msra.mxu0 %v4362_v35  ;;  %2153 = vmatpush1.bf16.msra.mxu1 %v4365_v36  ;;  %v4409_v35 = vld [vmem:[#allocation8 + $0x22c] ss:$16 sps:$4 sm:$0xff]   ;;  %v4404_v36 = vld [vmem:[#allocation8 + $0x220] ss:$16 sps:$4 sm:$0xff]  }
 0x1bc   :  { %2068 = vmatprep.subr.bf16.mxu0 %v4370_v37  ;;  %2154 = vmatprep.subr.bf16.mxu1 %v4373_v38  ;;  %v4407_v37 = vld [vmem:[#allocation8 + $0x228] ss:$16 sps:$4 sm:$0xff]   ;;  %v4412_v38 = vld [vmem:[#allocation8 + $0x244] ss:$16 sps:$4 sm:$0xff]  }
 0x1bf   :  { %2069 = vmatpush1.bf16.msra.mxu0 %v4368_v39  ;;  %2155 = vmatpush1.bf16.msra.mxu1 %v4371_v40  ;;  %v4415_v39 = vld [vmem:[#allocation8 + $0x24c] ss:$16 sps:$4 sm:$0xff]   ;;  %v4410_v40 = vld [vmem:[#allocation8 + $0x240] ss:$16 sps:$4 sm:$0xff]  }
 0x1c0   :  { %2070 = vmatprep.subr.bf16.mxu0 %v4376_v41  ;;  %2156 = vmatprep.subr.bf16.mxu1 %v4379_v42  ;;  %v4413_v41 = vld [vmem:[#allocation8 + $0x248] ss:$16 sps:$4 sm:$0xff]   ;;  %v4418_v42 = vld [vmem:[#allocation8 + $0x264] ss:$16 sps:$4 sm:$0xff]  }
 0x1c3   :  { %2071 = vmatpush1.bf16.msra.mxu0 %v4374_v43  ;;  %2157 = vmatpush1.bf16.msra.mxu1 %v4377_v44  ;;  %v4421_v43 = vld [vmem:[#allocation8 + $0x26c] ss:$16 sps:$4 sm:$0xff]   ;;  %v4416_v44 = vld [vmem:[#allocation8 + $0x260] ss:$16 sps:$4 sm:$0xff]  }
 0x1c4   :  { %2072 = vmatprep.subr.bf16.mxu0 %v4382_v45  ;;  %2158 = vmatprep.subr.bf16.mxu1 %v4385_v46  ;;  %v4419_v45 = vld [vmem:[#allocation8 + $0x268] ss:$16 sps:$4 sm:$0xff]   ;;  %v4424_v46 = vld [vmem:[#allocation8 + $0x284] ss:$16 sps:$4 sm:$0xff]  }
 0x1c7   :  { %2073 = vmatpush1.bf16.msra.mxu0 %v4380_v47  ;;  %2159 = vmatpush1.bf16.msra.mxu1 %v4383_v48  ;;  %v4427_v47 = vld [vmem:[#allocation8 + $0x28c] ss:$16 sps:$4 sm:$0xff]   ;;  %v4422_v48 = vld [vmem:[#allocation8 + $0x280] ss:$16 sps:$4 sm:$0xff]  }
 0x1c8   :  { %2074 = vmatprep.subr.bf16.mxu0 %v4388_v49  ;;  %2160 = vmatprep.subr.bf16.mxu1 %v4391_v50  ;;  %v4425_v49 = vld [vmem:[#allocation8 + $0x288] ss:$16 sps:$4 sm:$0xff]   ;;  %v4430_v50 = vld [vmem:[#allocation8 + $0x2a4] ss:$16 sps:$4 sm:$0xff]  }
 0x1cb   :  { %2075 = vmatpush1.bf16.msra.mxu0 %v4386_v51  ;;  %2161 = vmatpush1.bf16.msra.mxu1 %v4389_v52  ;;  %v4433_v51 = vld [vmem:[#allocation8 + $0x2ac] ss:$16 sps:$4 sm:$0xff]   ;;  %v4428_v52 = vld [vmem:[#allocation8 + $0x2a0] ss:$16 sps:$4 sm:$0xff]  }
 0x1cc   :  { %2076 = vmatprep.subr.bf16.mxu0 %v4394_v54  ;;  %2162 = vmatprep.subr.bf16.mxu1 %v4397_v55  ;;  %v4431_v54 = vld [vmem:[#allocation8 + $0x2a8] ss:$16 sps:$4 sm:$0xff]   ;;  %v4436_v55 = vld [vmem:[#allocation8 + $0x2c4] ss:$16 sps:$4 sm:$0xff]  }
 0x1cf   :  { %2077 = vmatpush1.bf16.msra.mxu0 %v4392_v56  ;;  %2163 = vmatpush1.bf16.msra.mxu1 %v4395_v57  ;;  %v4439_v56 = vld [vmem:[#allocation8 + $0x2cc] ss:$16 sps:$4 sm:$0xff]   ;;  %v4434_v57 = vld [vmem:[#allocation8 + $0x2c0] ss:$16 sps:$4 sm:$0xff]  }
 0x1d0   :  { %2089 = vmatprep.subr.bf16.mxu0 %v4400_v58  ;;  %2175 = vmatprep.subr.bf16.mxu1 %v4403_v59  ;;  %v4437_v58 = vld [vmem:[#allocation8 + $0x2c8] ss:$16 sps:$4 sm:$0xff]   ;;  %v4442_v59 = vld [vmem:[#allocation8 + $0x2e4] ss:$16 sps:$4 sm:$0xff]  }
 0x265   :  { %v1149_v1 = vpop.f32.mrb[4].mxu0  ;;  %v1235_v2 = vpop.f32.mrb[4].mxu1 }
 0x266   :  { %v4042_v3 = vadd.f32 %v1149_v1, %v415_v61  ;;  %v4046_v4 = vadd.f32 %v1235_v2, %v423_v62  ;;  %v1151_v53 = vpop.f32.mrb[5].mxu0  ;;  %v1237_v5 = vpop.f32.mrb[5].mxu1  ;;  %v4446_v1 = vld [vmem:[#allocation8 + $0x300] ss:$16 sps:$4 sm:$0xff]   ;;  %v4449_v2 = vld [vmem:[#allocation8 + $0x308] ss:$16 sps:$4 sm:$0xff]  }
 0x267   :  { %v4043_v6 = vadd.f32 %v1151_v53, %v419_v63  ;;  %v4047_v7 = vadd.f32 %v1237_v5, %v427_v0  ;;  %v1153_v8 = vpop.f32.mrb[6].mxu0  ;;  %v1239_v9 = vpop.f32.mrb[6].mxu1  ;;  %v4452_v53 = vld [vmem:[#allocation8 + $0x320] ss:$16 sps:$4 sm:$0xff]   ;;  %v4455_v5 = vld [vmem:[#allocation8 + $0x328] ss:$16 sps:$4 sm:$0xff]  }
 0x268   :  { %v4044_v10 = vadd.f32 %v1153_v8, %v415_v61  ;;  %v4048_v11 = vadd.f32 %v1239_v9, %v423_v62  ;;  %v1155_v12 = vpop.f32.mrb[7].mxu0  ;;  %v1241_v13 = vpop.f32.mrb[7].mxu1  ;;  %v1244_v20 = vmax.f32 %v4042_v3, 0.0  ;;  %v1246_v21 = vmax.f32 %v4046_v4, 0.0  ;;  %v4440_v61 = vld [vmem:[#allocation8 + $0x2e0] ss:$16 sps:$4 sm:$0xff]  }
 0x269   :  { %v4045_v14 = vadd.f32 %v1155_v12, %v419_v63  ;;  %v4049_v19 = vadd.f32 %v1241_v13, %v427_v0  ;;  %v1245_v24 = vmax.f32 %v4043_v6, 0.0  ;;  %v1247_v25 = vmax.f32 %v4047_v7, 0.0  ;;  %v4443_v62 = vld [vmem:[#allocation8 + $0x2e8] ss:$16 sps:$4 sm:$0xff]   ;;  %v4448_v63 = vld [vmem:[#allocation8 + $0x304] ss:$16 sps:$4 sm:$0xff]  }
 0x26a   :  { %v1248_v22 = vmax.f32 %v4044_v10, 0.0  ;;  %v1250_v23 = vmax.f32 %v4048_v11, 0.0  ;;  %v4451_v0 = vld [vmem:[#allocation8 + $0x30c] ss:$16 sps:$4 sm:$0xff]   ;;  %v4454_v3 = vld [vmem:[#allocation8 + $0x324] ss:$16 sps:$4 sm:$0xff]  }
 0x26b   :  { %v1249_v26 = vmax.f32 %v4045_v14, 0.0  ;;  %v1251_v27 = vmax.f32 %v4049_v19, 0.0  ;;  %v4457_v4 = vld [vmem:[#allocation8 + $0x32c] ss:$16 sps:$4 sm:$0xff]   ;;  %v4460_v6 = vld [vmem:[#allocation8 + $0x344] ss:$16 sps:$4 sm:$0xff]  }
 0x26c   :  { %v1252_v28 = vpack.c.bf16 %v1248_v22, %v1244_v20  ;;  %v5069_v29 = vpack.c.bf16 %v1250_v23, %v1246_v21  ;;  %v4463_v7 = vld [vmem:[#allocation8 + $0x34c] ss:$16 sps:$4 sm:$0xff]   ;;  %v4458_v8 = vld [vmem:[#allocation8 + $0x340] ss:$16 sps:$4 sm:$0xff]   ;;  %v4461_v9 = vld [vmem:[#allocation8 + $0x348] ss:$16 sps:$4 sm:$0xff]  }
 0x26d   :  { %v1253_v30 = vpack.c.bf16 %v1249_v26, %v1245_v24  ;;  %v1255_v31 = vpack.c.bf16 %v1251_v27, %v1247_v25  ;;  %v4466_v10 = vld [vmem:[#allocation8 + $0x364] ss:$16 sps:$4 sm:$0xff]   ;;  %v4469_v11 = vld [vmem:[#allocation8 + $0x36c] ss:$16 sps:$4 sm:$0xff]   ;;  %v4464_v12 = vld [vmem:[#allocation8 + $0x360] ss:$16 sps:$4 sm:$0xff]  }
 0x26e   :  { %v4467_v13 = vld [vmem:[#allocation8 + $0x368] ss:$16 sps:$4 sm:$0xff]   ;;  %v4472_v14 = vld [vmem:[#allocation8 + $0x384] ss:$16 sps:$4 sm:$0xff]   ;;  %v4475_v19 = vld [vmem:[#allocation8 + $0x38c] ss:$16 sps:$4 sm:$0xff]  }
 0x26f   :  { %2078 = vmatprep.mubr.bf16.mxu0 %v1253_v30  ;;  %2164 = vmatprep.mubr.bf16.mxu1 %v1253_v30  ;;  %v4470_v20 = vld [vmem:[#allocation8 + $0x380] ss:$16 sps:$4 sm:$0xff]   ;;  %v4473_v21 = vld [vmem:[#allocation8 + $0x388] ss:$16 sps:$4 sm:$0xff]   ;;  %v4478_v22 = vld [vmem:[#allocation8 + $0x3a4] ss:$16 sps:$4 sm:$0xff]  }
 0x270   :  { %2079 = vmatmul.mubr.bf16.vlgmr.msra.gmra.mrb[8].mxu0 %v1252_v28  ;;  %2165 = vmatmul.mubr.bf16.vlgmr.msra.gmra.mrb[8].mxu1 %v1252_v28  ;;  %v4481_v23 = vld [vmem:[#allocation8 + $0x3ac] ss:$16 sps:$4 sm:$0xff]   ;;  %v4476_v24 = vld [vmem:[#allocation8 + $0x3a0] ss:$16 sps:$4 sm:$0xff]   ;;  %v4479_v25 = vld [vmem:[#allocation8 + $0x3a8] ss:$16 sps:$4 sm:$0xff]  }
 0x271   :  { %2090 = vmatpush1.bf16.msra.mxu0 %v4398_v32  ;;  %2176 = vmatpush1.bf16.msra.mxu1 %v4401_v33  ;;  %v4484_v26 = vld [vmem:[#allocation8 + $0x3c4] ss:$16 sps:$4 sm:$0xff]   ;;  %v4487_v27 = vld [vmem:[#allocation8 + $0x3cc] ss:$16 sps:$4 sm:$0xff]   ;;  %v4482_v28 = vld [vmem:[#allocation8 + $0x3c0] ss:$16 sps:$4 sm:$0xff]  }
 0x272   :  { %2121 = vmatprep.mubr.bf16.mxu0 %v1255_v31  ;;  %2207 = vmatprep.mubr.bf16.mxu1 %v1255_v31  ;;  %v4485_v30 = vld [vmem:[#allocation8 + $0x3c8] ss:$16 sps:$4 sm:$0xff]   ;;  %v4490_v31 = vld [vmem:[#allocation8 + $0x3e4] ss:$16 sps:$4 sm:$0xff]   ;;  %v4493_v32 = vld [vmem:[#allocation8 + $0x3ec] ss:$16 sps:$4 sm:$0xff]  }
 0x273   :  { %2091 = vmatprep.subr.bf16.mxu0 %v4406_v34  ;;  %2177 = vmatprep.subr.bf16.mxu1 %v4409_v35  ;;  %v4488_v33 = vld [vmem:[#allocation8 + $0x3e0] ss:$16 sps:$4 sm:$0xff]   ;;  %v4491_v34 = vld [vmem:[#allocation8 + $0x3e8] ss:$16 sps:$4 sm:$0xff]   ;;  %v4496_v35 = vld [vmem:[#allocation10 + $0x4] ss:$16 sps:$4 sm:$0xff]  }
 0x275   :  { %2092 = vmatpush1.bf16.msra.mxu0 %v4404_v36  ;;  %2178 = vmatpush1.bf16.msra.mxu1 %v4407_v37  ;;  %v4499_v36 = vld [vmem:[#allocation10 + $0xc] ss:$16 sps:$4 sm:$0xff]   ;;  %v4494_v37 = vld [vmem:[#allocation10] ss:$16 sps:$4 sm:$0xff]  }
 0x276   :  { %2093 = vmatprep.subr.bf16.mxu0 %v4412_v38  ;;  %2179 = vmatprep.subr.bf16.mxu1 %v4415_v39  ;;  %v4497_v38 = vld [vmem:[#allocation10 + $0x8] ss:$16 sps:$4 sm:$0xff]   ;;  %v4502_v39 = vld [vmem:[#allocation10 + $0x24] ss:$16 sps:$4 sm:$0xff]  }
 0x279   :  { %2094 = vmatpush1.bf16.msra.mxu0 %v4410_v40  ;;  %2180 = vmatpush1.bf16.msra.mxu1 %v4413_v41  ;;  %v4505_v40 = vld [vmem:[#allocation10 + $0x2c] ss:$16 sps:$4 sm:$0xff]   ;;  %v4500_v41 = vld [vmem:[#allocation10 + $0x20] ss:$16 sps:$4 sm:$0xff]  }
 0x27a   :  { %2095 = vmatprep.subr.bf16.mxu0 %v4418_v42  ;;  %2181 = vmatprep.subr.bf16.mxu1 %v4421_v43  ;;  %v4503_v42 = vld [vmem:[#allocation10 + $0x28] ss:$16 sps:$4 sm:$0xff]   ;;  %v4508_v43 = vld [vmem:[#allocation10 + $0x44] ss:$16 sps:$4 sm:$0xff]  }
 0x27d   :  { %2096 = vmatpush1.bf16.msra.mxu0 %v4416_v44  ;;  %2182 = vmatpush1.bf16.msra.mxu1 %v4419_v45  ;;  %v4511_v44 = vld [vmem:[#allocation10 + $0x4c] ss:$16 sps:$4 sm:$0xff]   ;;  %v4506_v45 = vld [vmem:[#allocation10 + $0x40] ss:$16 sps:$4 sm:$0xff]  }
 0x27e   :  { %2097 = vmatprep.subr.bf16.mxu0 %v4424_v46  ;;  %2183 = vmatprep.subr.bf16.mxu1 %v4427_v47  ;;  %v4509_v46 = vld [vmem:[#allocation10 + $0x48] ss:$16 sps:$4 sm:$0xff]   ;;  %v4514_v47 = vld [vmem:[#allocation10 + $0x64] ss:$16 sps:$4 sm:$0xff]  }
 0x281   :  { %2098 = vmatpush1.bf16.msra.mxu0 %v4422_v48  ;;  %2184 = vmatpush1.bf16.msra.mxu1 %v4425_v49  ;;  %v4517_v48 = vld [vmem:[#allocation10 + $0x6c] ss:$16 sps:$4 sm:$0xff]   ;;  %v4512_v49 = vld [vmem:[#allocation10 + $0x60] ss:$16 sps:$4 sm:$0xff]  }
 0x282   :  { %2099 = vmatprep.subr.bf16.mxu0 %v4430_v50  ;;  %2185 = vmatprep.subr.bf16.mxu1 %v4433_v51  ;;  %v4520_v50 = vld [vmem:[#allocation10 + $0x84] ss:$16 sps:$4 sm:$0xff]   ;;  %v4523_v51 = vld [vmem:[#allocation10 + $0x8c] ss:$16 sps:$4 sm:$0xff]  }
 0x285   :  { %2100 = vmatpush1.bf16.msra.mxu0 %v4428_v52  ;;  %2186 = vmatpush1.bf16.msra.mxu1 %v4431_v54  ;;  %v4518_v52 = vld [vmem:[#allocation10 + $0x80] ss:$16 sps:$4 sm:$0xff]   ;;  %v4521_v54 = vld [vmem:[#allocation10 + $0x88] ss:$16 sps:$4 sm:$0xff]  }
 0x286   :  { %2101 = vmatprep.subr.bf16.mxu0 %v4436_v55  ;;  %2187 = vmatprep.subr.bf16.mxu1 %v4439_v56  ;;  %v4526_v55 = vld [vmem:[#allocation10 + $0xa4] ss:$16 sps:$4 sm:$0xff]   ;;  %v4529_v56 = vld [vmem:[#allocation10 + $0xac] ss:$16 sps:$4 sm:$0xff]  }
 0x289   :  { %2102 = vmatpush1.bf16.msra.mxu0 %v4434_v57  ;;  %2188 = vmatpush1.bf16.msra.mxu1 %v4437_v58  ;;  %v4524_v57 = vld [vmem:[#allocation10 + $0xa0] ss:$16 sps:$4 sm:$0xff]   ;;  %v4527_v58 = vld [vmem:[#allocation10 + $0xa8] ss:$16 sps:$4 sm:$0xff]  }
 0x28a   :  { %2103 = vmatprep.subr.bf16.mxu0 %v4442_v59  ;;  %2189 = vmatprep.subr.bf16.mxu1 %v4445_v60  ;;  %v4532_v59 = vld [vmem:[#allocation10 + $0xc4] ss:$16 sps:$4 sm:$0xff]   ;;  %v4535_v60 = vld [vmem:[#allocation10 + $0xcc] ss:$16 sps:$4 sm:$0xff]  }
 0x28d   :  { %2104 = vmatpush1.bf16.msra.mxu0 %v4440_v61  ;;  %2190 = vmatpush1.bf16.msra.mxu1 %v4443_v62  ;;  %v4530_v61 = vld [vmem:[#allocation10 + $0xc0] ss:$16 sps:$4 sm:$0xff]   ;;  %v4533_v62 = vld [vmem:[#allocation10 + $0xc8] ss:$16 sps:$4 sm:$0xff]  }
 0x28e   :  { %2105 = vmatprep.subr.bf16.mxu0 %v4448_v63  ;;  %2191 = vmatprep.subr.bf16.mxu1 %v4451_v0  ;;  %v4538_v63 = vld [vmem:[#allocation10 + $0xe4] ss:$16 sps:$4 sm:$0xff]   ;;  %v4541_v0 = vld [vmem:[#allocation10 + $0xec] ss:$16 sps:$4 sm:$0xff]  }
 0x291   :  { %2106 = vmatpush1.bf16.msra.mxu0 %v4446_v1  ;;  %2192 = vmatpush1.bf16.msra.mxu1 %v4449_v2  ;;  %v4536_v1 = vld [vmem:[#allocation10 + $0xe0] ss:$16 sps:$4 sm:$0xff]   ;;  %v4539_v2 = vld [vmem:[#allocation10 + $0xe8] ss:$16 sps:$4 sm:$0xff]  }
 0x292   :  { %2107 = vmatprep.subr.bf16.mxu0 %v4454_v3  ;;  %2193 = vmatprep.subr.bf16.mxu1 %v4457_v4  ;;  %v4544_v3 = vld [vmem:[#allocation10 + $0x104] ss:$16 sps:$4 sm:$0xff]   ;;  %v4547_v4 = vld [vmem:[#allocation10 + $0x10c] ss:$16 sps:$4 sm:$0xff]  }
 0x295   :  { %2108 = vmatpush1.bf16.msra.mxu0 %v4452_v53  ;;  %2194 = vmatpush1.bf16.msra.mxu1 %v4455_v5  ;;  %v4542_v53 = vld [vmem:[#allocation10 + $0x100] ss:$16 sps:$4 sm:$0xff]   ;;  %v4545_v5 = vld [vmem:[#allocation10 + $0x108] ss:$16 sps:$4 sm:$0xff]  }
 0x296   :  { %2109 = vmatprep.subr.bf16.mxu0 %v4460_v6  ;;  %2195 = vmatprep.subr.bf16.mxu1 %v4463_v7  ;;  %v4550_v6 = vld [vmem:[#allocation10 + $0x124] ss:$16 sps:$4 sm:$0xff]   ;;  %v4553_v7 = vld [vmem:[#allocation10 + $0x12c] ss:$16 sps:$4 sm:$0xff]  }
 0x299   :  { %2110 = vmatpush1.bf16.msra.mxu0 %v4458_v8  ;;  %2196 = vmatpush1.bf16.msra.mxu1 %v4461_v9  ;;  %v4548_v8 = vld [vmem:[#allocation10 + $0x120] ss:$16 sps:$4 sm:$0xff]   ;;  %v4551_v9 = vld [vmem:[#allocation10 + $0x128] ss:$16 sps:$4 sm:$0xff]  }
 0x29a   :  { %2111 = vmatprep.subr.bf16.mxu0 %v4466_v10  ;;  %2197 = vmatprep.subr.bf16.mxu1 %v4469_v11  ;;  %v4556_v10 = vld [vmem:[#allocation10 + $0x144] ss:$16 sps:$4 sm:$0xff]   ;;  %v4559_v11 = vld [vmem:[#allocation10 + $0x14c] ss:$16 sps:$4 sm:$0xff]  }
 0x29d   :  { %2112 = vmatpush1.bf16.msra.mxu0 %v4464_v12  ;;  %2198 = vmatpush1.bf16.msra.mxu1 %v4467_v13  ;;  %v4554_v12 = vld [vmem:[#allocation10 + $0x140] ss:$16 sps:$4 sm:$0xff]   ;;  %v4557_v13 = vld [vmem:[#allocation10 + $0x148] ss:$16 sps:$4 sm:$0xff]  }
 0x29e   :  { %2113 = vmatprep.subr.bf16.mxu0 %v4472_v14  ;;  %2199 = vmatprep.subr.bf16.mxu1 %v4475_v19  ;;  %v4562_v14 = vld [vmem:[#allocation10 + $0x164] ss:$16 sps:$4 sm:$0xff]   ;;  %v4565_v19 = vld [vmem:[#allocation10 + $0x16c] ss:$16 sps:$4 sm:$0xff]  }
 0x2a1   :  { %2114 = vmatpush1.bf16.msra.mxu0 %v4470_v20  ;;  %2200 = vmatpush1.bf16.msra.mxu1 %v4473_v21  ;;  %v4560_v20 = vld [vmem:[#allocation10 + $0x160] ss:$16 sps:$4 sm:$0xff]   ;;  %v4563_v21 = vld [vmem:[#allocation10 + $0x168] ss:$16 sps:$4 sm:$0xff]  }
 0x2a2   :  { %2115 = vmatprep.subr.bf16.mxu0 %v4478_v22  ;;  %2201 = vmatprep.subr.bf16.mxu1 %v4481_v23  ;;  %v4568_v22 = vld [vmem:[#allocation10 + $0x184] ss:$16 sps:$4 sm:$0xff]   ;;  %v4571_v23 = vld [vmem:[#allocation10 + $0x18c] ss:$16 sps:$4 sm:$0xff]  }
 0x2a5   :  { %2116 = vmatpush1.bf16.msra.mxu0 %v4476_v24  ;;  %2202 = vmatpush1.bf16.msra.mxu1 %v4479_v25  ;;  %v4566_v24 = vld [vmem:[#allocation10 + $0x180] ss:$16 sps:$4 sm:$0xff]   ;;  %v4569_v25 = vld [vmem:[#allocation10 + $0x188] ss:$16 sps:$4 sm:$0xff]  }
 0x2a6   :  { %2117 = vmatprep.subr.bf16.mxu0 %v4484_v26  ;;  %2203 = vmatprep.subr.bf16.mxu1 %v4487_v27  ;;  %v4574_v26 = vld [vmem:[#allocation10 + $0x1a4] ss:$16 sps:$4 sm:$0xff]   ;;  %v4577_v27 = vld [vmem:[#allocation10 + $0x1ac] ss:$16 sps:$4 sm:$0xff]  }
 0x2a9   :  { %2118 = vmatpush1.bf16.msra.mxu0 %v4482_v28  ;;  %2204 = vmatpush1.bf16.msra.mxu1 %v4485_v30  ;;  %v4572_v28 = vld [vmem:[#allocation10 + $0x1a0] ss:$16 sps:$4 sm:$0xff]   ;;  %v4575_v30 = vld [vmem:[#allocation10 + $0x1a8] ss:$16 sps:$4 sm:$0xff]  }
 0x2aa   :  { %2119 = vmatprep.subr.bf16.mxu0 %v4490_v31  ;;  %2205 = vmatprep.subr.bf16.mxu1 %v4493_v32  ;;  %v4580_v31 = vld [vmem:[#allocation10 + $0x1c4] ss:$16 sps:$4 sm:$0xff]   ;;  %v4583_v32 = vld [vmem:[#allocation10 + $0x1cc] ss:$16 sps:$4 sm:$0xff]  }
 0x2ad   :  { %2120 = vmatpush1.bf16.msra.mxu0 %v4488_v33  ;;  %2206 = vmatpush1.bf16.msra.mxu1 %v4491_v34  ;;  %v4578_v33 = vld [vmem:[#allocation10 + $0x1c0] ss:$16 sps:$4 sm:$0xff]   ;;  %v4581_v34 = vld [vmem:[#allocation10 + $0x1c8] ss:$16 sps:$4 sm:$0xff]  }
 0x2ae   :  { %3020 = vmatprep.subr.bf16.mxu0 %v4496_v35  ;;  %3106 = vmatprep.subr.bf16.mxu1 %v4499_v36  ;;  %v4586_v35 = vld [vmem:[#allocation10 + $0x1e4] ss:$16 sps:$4 sm:$0xff]   ;;  %v4589_v36 = vld [vmem:[#allocation10 + $0x1ec] ss:$16 sps:$4 sm:$0xff]  }
 0x2b0   :  { %2122 = vmatmul.mubr.bf16.vlgmr.msra.gmra.mrb[8].mxu0 %v5069_v29  ;;  %2208 = vmatmul.mubr.bf16.vlgmr.msra.gmra.mrb[8].mxu1 %v5069_v29  ;;  %v4515_v29 = vld [vmem:[#allocation10 + $0x68] ss:$16 sps:$4 sm:$0xff]  }
 0x2b1   :  { %3021 = vmatpush1.bf16.msra.mxu0 %v4494_v37  ;;  %3107 = vmatpush1.bf16.msra.mxu1 %v4497_v38  ;;  %v4584_v37 = vld [vmem:[#allocation10 + $0x1e0] ss:$16 sps:$4 sm:$0xff]   ;;  %v4587_v38 = vld [vmem:[#allocation10 + $0x1e8] ss:$16 sps:$4 sm:$0xff]  }
 0x2b2   :  { %3022 = vmatprep.subr.bf16.mxu0 %v4502_v39  ;;  %3108 = vmatprep.subr.bf16.mxu1 %v4505_v40  ;;  %v4592_v39 = vld [vmem:[#allocation10 + $0x204] ss:$16 sps:$4 sm:$0xff]   ;;  %v4595_v40 = vld [vmem:[#allocation10 + $0x20c] ss:$16 sps:$4 sm:$0xff]  }
 0x2b5   :  { %3023 = vmatpush1.bf16.msra.mxu0 %v4500_v41  ;;  %3109 = vmatpush1.bf16.msra.mxu1 %v4503_v42  ;;  %v1384_v41 = vld [vmem:[%s5115_s6] sm:$0xf] }
 0x2b6   :  { %3024 = vmatprep.subr.bf16.mxu0 %v4508_v43  ;;  %3110 = vmatprep.subr.bf16.mxu1 %v4511_v44  ;;  %v1389_v42 = vrot.slane %v1384_v41, %v5046_v15  ;;  %v1397_v43 = vrot.slane %v1384_v41, %v5050_v17  ;;  %v1393_v44 = vrot.slane %v1384_v41, %v5048_v16 }
 0x2b9   :  { %3025 = vmatpush1.bf16.msra.mxu0 %v4506_v45  ;;  %3111 = vmatpush1.bf16.msra.mxu1 %v4509_v46  ;;  %v1401_v45 = vrot.slane %v1384_v41, %v5052_v18  ;;  %v4637_v41 = vld [vmem:[#allocation10 + $0x2ec] ss:$16 sps:$4 sm:$0xff]  }
 0x2ba   :  { %3026 = vmatprep.subr.bf16.mxu0 %v4514_v47  ;;  %3112 = vmatprep.subr.bf16.mxu1 %v4517_v48 }
 0x2bd   :  { %3027 = vmatpush1.bf16.msra.mxu0 %v4512_v49  ;;  %3113 = vmatpush1.bf16.msra.mxu1 %v4515_v29 }
 0x2be   :  { %3028 = vmatprep.subr.bf16.mxu0 %v4520_v50  ;;  %3114 = vmatprep.subr.bf16.mxu1 %v4523_v51 }
 0x2c1   :  { %3029 = vmatpush1.bf16.msra.mxu0 %v4518_v52  ;;  %3115 = vmatpush1.bf16.msra.mxu1 %v4521_v54 }
 0x2c2   :  { %3030 = vmatprep.subr.bf16.mxu0 %v4526_v55  ;;  %3116 = vmatprep.subr.bf16.mxu1 %v4529_v56 }
 0x2c5   :  { %3031 = vmatpush1.bf16.msra.mxu0 %v4524_v57  ;;  %3117 = vmatpush1.bf16.msra.mxu1 %v4527_v58 }
 0x2c6   :  { %3032 = vmatprep.subr.bf16.mxu0 %v4532_v59  ;;  %3118 = vmatprep.subr.bf16.mxu1 %v4535_v60 }
 0x2c9   :  { %3033 = vmatpush1.bf16.msra.mxu0 %v4530_v61  ;;  %3119 = vmatpush1.bf16.msra.mxu1 %v4533_v62 }
 0x2ca   :  { %3034 = vmatprep.subr.bf16.mxu0 %v4538_v63  ;;  %3120 = vmatprep.subr.bf16.mxu1 %v4541_v0 }
 0x2cd   :  { %3035 = vmatpush1.bf16.msra.mxu0 %v4536_v1  ;;  %3121 = vmatpush1.bf16.msra.mxu1 %v4539_v2 }
 0x2ce   :  { %3036 = vmatprep.subr.bf16.mxu0 %v4544_v3  ;;  %3122 = vmatprep.subr.bf16.mxu1 %v4547_v4 }
 0x2d1   :  { %3037 = vmatpush1.bf16.msra.mxu0 %v4542_v53  ;;  %3123 = vmatpush1.bf16.msra.mxu1 %v4545_v5 }
 0x2d2   :  { %3038 = vmatprep.subr.bf16.mxu0 %v4550_v6  ;;  %3124 = vmatprep.subr.bf16.mxu1 %v4553_v7 }
 0x2d5   :  { %3039 = vmatpush1.bf16.msra.mxu0 %v4548_v8  ;;  %3125 = vmatpush1.bf16.msra.mxu1 %v4551_v9  ;;  %v4590_v9 = vld [vmem:[#allocation10 + $0x200] ss:$16 sps:$4 sm:$0xff]  }
 0x2d6   :  { %3040 = vmatprep.subr.bf16.mxu0 %v4556_v10  ;;  %3126 = vmatprep.subr.bf16.mxu1 %v4559_v11  ;;  %v4593_v10 = vld [vmem:[#allocation10 + $0x208] ss:$16 sps:$4 sm:$0xff]   ;;  %v4598_v11 = vld [vmem:[#allocation10 + $0x224] ss:$16 sps:$4 sm:$0xff]  }
 0x2d9   :  { %3041 = vmatpush1.bf16.msra.mxu0 %v4554_v12  ;;  %3127 = vmatpush1.bf16.msra.mxu1 %v4557_v13  ;;  %v4601_v12 = vld [vmem:[#allocation10 + $0x22c] ss:$16 sps:$4 sm:$0xff]   ;;  %v4596_v13 = vld [vmem:[#allocation10 + $0x220] ss:$16 sps:$4 sm:$0xff]  }
 0x2da   :  { %3042 = vmatprep.subr.bf16.mxu0 %v4562_v14  ;;  %3128 = vmatprep.subr.bf16.mxu1 %v4565_v19  ;;  %v4599_v14 = vld [vmem:[#allocation10 + $0x228] ss:$16 sps:$4 sm:$0xff]   ;;  %v4604_v19 = vld [vmem:[#allocation10 + $0x244] ss:$16 sps:$4 sm:$0xff]  }
 0x2dd   :  { %3043 = vmatpush1.bf16.msra.mxu0 %v4560_v20  ;;  %3129 = vmatpush1.bf16.msra.mxu1 %v4563_v21  ;;  %v4607_v20 = vld [vmem:[#allocation10 + $0x24c] ss:$16 sps:$4 sm:$0xff]   ;;  %v4602_v21 = vld [vmem:[#allocation10 + $0x240] ss:$16 sps:$4 sm:$0xff]  }
 0x2de   :  { %3044 = vmatprep.subr.bf16.mxu0 %v4568_v22  ;;  %3130 = vmatprep.subr.bf16.mxu1 %v4571_v23  ;;  %v4605_v22 = vld [vmem:[#allocation10 + $0x248] ss:$16 sps:$4 sm:$0xff]   ;;  %v4610_v23 = vld [vmem:[#allocation10 + $0x264] ss:$16 sps:$4 sm:$0xff]  }
 0x2e1   :  { %3045 = vmatpush1.bf16.msra.mxu0 %v4566_v24  ;;  %3131 = vmatpush1.bf16.msra.mxu1 %v4569_v25  ;;  %v4613_v24 = vld [vmem:[#allocation10 + $0x26c] ss:$16 sps:$4 sm:$0xff]   ;;  %v4608_v25 = vld [vmem:[#allocation10 + $0x260] ss:$16 sps:$4 sm:$0xff]  }
 0x2e2   :  { %3046 = vmatprep.subr.bf16.mxu0 %v4574_v26  ;;  %3132 = vmatprep.subr.bf16.mxu1 %v4577_v27  ;;  %v4611_v26 = vld [vmem:[#allocation10 + $0x268] ss:$16 sps:$4 sm:$0xff]   ;;  %v4616_v27 = vld [vmem:[#allocation10 + $0x284] ss:$16 sps:$4 sm:$0xff]  }
 0x2e5   :  { %3047 = vmatpush1.bf16.msra.mxu0 %v4572_v28  ;;  %3133 = vmatpush1.bf16.msra.mxu1 %v4575_v30  ;;  %v4619_v28 = vld [vmem:[#allocation10 + $0x28c] ss:$16 sps:$4 sm:$0xff]   ;;  %v4614_v30 = vld [vmem:[#allocation10 + $0x280] ss:$16 sps:$4 sm:$0xff]  }
 0x2e6   :  { %3048 = vmatprep.subr.bf16.mxu0 %v4580_v31  ;;  %3134 = vmatprep.subr.bf16.mxu1 %v4583_v32  ;;  %v4617_v31 = vld [vmem:[#allocation10 + $0x288] ss:$16 sps:$4 sm:$0xff]   ;;  %v4622_v32 = vld [vmem:[#allocation10 + $0x2a4] ss:$16 sps:$4 sm:$0xff]  }
 0x2e9   :  { %3049 = vmatpush1.bf16.msra.mxu0 %v4578_v33  ;;  %3135 = vmatpush1.bf16.msra.mxu1 %v4581_v34  ;;  %v4625_v33 = vld [vmem:[#allocation10 + $0x2ac] ss:$16 sps:$4 sm:$0xff]   ;;  %v4620_v34 = vld [vmem:[#allocation10 + $0x2a0] ss:$16 sps:$4 sm:$0xff]  }
 0x2ea   :  { %3050 = vmatprep.subr.bf16.mxu0 %v4586_v35  ;;  %3136 = vmatprep.subr.bf16.mxu1 %v4589_v36  ;;  %v4623_v35 = vld [vmem:[#allocation10 + $0x2a8] ss:$16 sps:$4 sm:$0xff]   ;;  %v4628_v36 = vld [vmem:[#allocation10 + $0x2c4] ss:$16 sps:$4 sm:$0xff]  }
 0x2ed   :  { %3051 = vmatpush1.bf16.msra.mxu0 %v4584_v37  ;;  %3137 = vmatpush1.bf16.msra.mxu1 %v4587_v38  ;;  %v4631_v37 = vld [vmem:[#allocation10 + $0x2cc] ss:$16 sps:$4 sm:$0xff]   ;;  %v4626_v38 = vld [vmem:[#allocation10 + $0x2c0] ss:$16 sps:$4 sm:$0xff]  }
 0x2ee   :  { %3063 = vmatprep.subr.bf16.mxu0 %v4592_v39  ;;  %3149 = vmatprep.subr.bf16.mxu1 %v4595_v40  ;;  %v4629_v39 = vld [vmem:[#allocation10 + $0x2c8] ss:$16 sps:$4 sm:$0xff]   ;;  %v4634_v40 = vld [vmem:[#allocation10 + $0x2e4] ss:$16 sps:$4 sm:$0xff]  }
 0x383   :  { %v2123_v46 = vpop.f32.mrb[8].mxu0  ;;  %v2209_v47 = vpop.f32.mrb[8].mxu1 }
 0x384   :  { %v4050_v48 = vadd.f32 %v2123_v46, %v1389_v42  ;;  %v4054_v49 = vadd.f32 %v2209_v47, %v1397_v43  ;;  %v2125_v29 = vpop.f32.mrb[9].mxu0  ;;  %v2211_v50 = vpop.f32.mrb[9].mxu1  ;;  %v4638_v46 = vld [vmem:[#allocation10 + $0x300] ss:$16 sps:$4 sm:$0xff]   ;;  %v4641_v47 = vld [vmem:[#allocation10 + $0x308] ss:$16 sps:$4 sm:$0xff]  }
 0x385   :  { %v4051_v51 = vadd.f32 %v2125_v29, %v1393_v44  ;;  %v4055_v52 = vadd.f32 %v2211_v50, %v1401_v45  ;;  %v2127_v54 = vpop.f32.mrb[10].mxu0  ;;  %v2213_v55 = vpop.f32.mrb[10].mxu1  ;;  %v4644_v29 = vld [vmem:[#allocation10 + $0x320] ss:$16 sps:$4 sm:$0xff]   ;;  %v4647_v50 = vld [vmem:[#allocation10 + $0x328] ss:$16 sps:$4 sm:$0xff]  }
 0x386   :  { %v4052_v56 = vadd.f32 %v2127_v54, %v1389_v42  ;;  %v4056_v57 = vadd.f32 %v2213_v55, %v1397_v43  ;;  %v2129_v58 = vpop.f32.mrb[11].mxu0  ;;  %v2215_v59 = vpop.f32.mrb[11].mxu1  ;;  %v2218_v62 = vmax.f32 %v4050_v48, 0.0  ;;  %v2220_v63 = vmax.f32 %v4054_v49, 0.0  ;;  %v4632_v42 = vld [vmem:[#allocation10 + $0x2e0] ss:$16 sps:$4 sm:$0xff]  }
 0x387   :  { %v4053_v60 = vadd.f32 %v2129_v58, %v1393_v44  ;;  %v4057_v61 = vadd.f32 %v2215_v59, %v1401_v45  ;;  %v2219_v2 = vmax.f32 %v4051_v51, 0.0  ;;  %v2221_v3 = vmax.f32 %v4055_v52, 0.0  ;;  %v4635_v43 = vld [vmem:[#allocation10 + $0x2e8] ss:$16 sps:$4 sm:$0xff]   ;;  %v4640_v44 = vld [vmem:[#allocation10 + $0x304] ss:$16 sps:$4 sm:$0xff]  }
 0x388   :  { %v2222_v0 = vmax.f32 %v4052_v56, 0.0  ;;  %v2224_v1 = vmax.f32 %v4056_v57, 0.0  ;;  %v4643_v45 = vld [vmem:[#allocation10 + $0x30c] ss:$16 sps:$4 sm:$0xff]   ;;  %v4646_v48 = vld [vmem:[#allocation10 + $0x324] ss:$16 sps:$4 sm:$0xff]  }
 0x389   :  { %v2223_v4 = vmax.f32 %v4053_v60, 0.0  ;;  %v2225_v53 = vmax.f32 %v4057_v61, 0.0  ;;  %v4649_v49 = vld [vmem:[#allocation10 + $0x32c] ss:$16 sps:$4 sm:$0xff]   ;;  %v4652_v51 = vld [vmem:[#allocation10 + $0x344] ss:$16 sps:$4 sm:$0xff]  }
 0x38a   :  { %v2226_v5 = vpack.c.bf16 %v2222_v0, %v2218_v62  ;;  %v5080_v6 = vpack.c.bf16 %v2224_v1, %v2220_v63  ;;  %v4655_v52 = vld [vmem:[#allocation10 + $0x34c] ss:$16 sps:$4 sm:$0xff]   ;;  %v4650_v54 = vld [vmem:[#allocation10 + $0x340] ss:$16 sps:$4 sm:$0xff]   ;;  %v4653_v55 = vld [vmem:[#allocation10 + $0x348] ss:$16 sps:$4 sm:$0xff]  }
 0x38b   :  { %v2227_v7 = vpack.c.bf16 %v2223_v4, %v2219_v2  ;;  %v2229_v8 = vpack.c.bf16 %v2225_v53, %v2221_v3  ;;  %v4658_v56 = vld [vmem:[#allocation10 + $0x364] ss:$16 sps:$4 sm:$0xff]   ;;  %v4661_v57 = vld [vmem:[#allocation10 + $0x36c] ss:$16 sps:$4 sm:$0xff]   ;;  %v4656_v58 = vld [vmem:[#allocation10 + $0x360] ss:$16 sps:$4 sm:$0xff]  }
 0x38c   :  { %v4659_v59 = vld [vmem:[#allocation10 + $0x368] ss:$16 sps:$4 sm:$0xff]   ;;  %v4664_v60 = vld [vmem:[#allocation10 + $0x384] ss:$16 sps:$4 sm:$0xff]   ;;  %v4667_v61 = vld [vmem:[#allocation10 + $0x38c] ss:$16 sps:$4 sm:$0xff]  }
 0x38d   :  { %3052 = vmatprep.mubr.bf16.mxu0 %v2227_v7  ;;  %3138 = vmatprep.mubr.bf16.mxu1 %v2227_v7  ;;  %v4662_v62 = vld [vmem:[#allocation10 + $0x380] ss:$16 sps:$4 sm:$0xff]   ;;  %v4665_v63 = vld [vmem:[#allocation10 + $0x388] ss:$16 sps:$4 sm:$0xff]   ;;  %v4670_v0 = vld [vmem:[#allocation10 + $0x3a4] ss:$16 sps:$4 sm:$0xff]  }
 0x38e   :  { %3053 = vmatmul.mubr.bf16.vlgmr.msra.gmra.mrb[12].mxu0 %v2226_v5  ;;  %3139 = vmatmul.mubr.bf16.vlgmr.msra.gmra.mrb[12].mxu1 %v2226_v5  ;;  %v4673_v1 = vld [vmem:[#allocation10 + $0x3ac] ss:$16 sps:$4 sm:$0xff]   ;;  %v4668_v2 = vld [vmem:[#allocation10 + $0x3a0] ss:$16 sps:$4 sm:$0xff]   ;;  %v4671_v3 = vld [vmem:[#allocation10 + $0x3a8] ss:$16 sps:$4 sm:$0xff]  }
 0x38f   :  { %3064 = vmatpush1.bf16.msra.mxu0 %v4590_v9  ;;  %3150 = vmatpush1.bf16.msra.mxu1 %v4593_v10  ;;  %v4676_v4 = vld [vmem:[#allocation10 + $0x3c4] ss:$16 sps:$4 sm:$0xff]   ;;  %v4679_v53 = vld [vmem:[#allocation10 + $0x3cc] ss:$16 sps:$4 sm:$0xff]   ;;  %v4674_v5 = vld [vmem:[#allocation10 + $0x3c0] ss:$16 sps:$4 sm:$0xff]  }
 0x390   :  { %3095 = vmatprep.mubr.bf16.mxu0 %v2229_v8  ;;  %3181 = vmatprep.mubr.bf16.mxu1 %v2229_v8  ;;  %v4677_v7 = vld [vmem:[#allocation10 + $0x3c8] ss:$16 sps:$4 sm:$0xff]   ;;  %v4682_v8 = vld [vmem:[#allocation10 + $0x3e4] ss:$16 sps:$4 sm:$0xff]   ;;  %v4685_v9 = vld [vmem:[#allocation10 + $0x3ec] ss:$16 sps:$4 sm:$0xff]  }
 0x391   :  { %3065 = vmatprep.subr.bf16.mxu0 %v4598_v11  ;;  %3151 = vmatprep.subr.bf16.mxu1 %v4601_v12  ;;  %v4680_v10 = vld [vmem:[#allocation10 + $0x3e0] ss:$16 sps:$4 sm:$0xff]   ;;  %v4683_v11 = vld [vmem:[#allocation10 + $0x3e8] ss:$16 sps:$4 sm:$0xff]  }
 0x392   :  { %v4686_v12 = vld [vmem:[#allocation11 + $0x40] sm:$0xff]  }
 0x393   :  { %3066 = vmatpush1.bf16.msra.mxu0 %v4596_v13  ;;  %3152 = vmatpush1.bf16.msra.mxu1 %v4599_v14  ;;  %v4687_v13 = vld [vmem:[#allocation11 + $0xc0] sm:$0xff]  }
 0x394   :  { %3067 = vmatprep.subr.bf16.mxu0 %v4604_v19  ;;  %3153 = vmatprep.subr.bf16.mxu1 %v4607_v20  ;;  %v4688_v14 = vld [vmem:[#allocation11] sm:$0xff]   ;;  %v4690_v20 = vld [vmem:[#allocation11 + $0x48] sm:$0xff]  }
 0x395   :  { %v4689_v19 = vld [vmem:[#allocation11 + $0x80] sm:$0xff]  }
 0x397   :  { %3068 = vmatpush1.bf16.msra.mxu0 %v4602_v21  ;;  %3154 = vmatpush1.bf16.msra.mxu1 %v4605_v22  ;;  %v4691_v21 = vld [vmem:[#allocation11 + $0xc8] sm:$0xff]  }
 0x398   :  { %3069 = vmatprep.subr.bf16.mxu0 %v4610_v23  ;;  %3155 = vmatprep.subr.bf16.mxu1 %v4613_v24  ;;  %v4692_v22 = vld [vmem:[#allocation11 + $0x8] sm:$0xff]   ;;  %v4694_v24 = vld [vmem:[#allocation11 + $0x50] sm:$0xff]  }
 0x399   :  { %v4693_v23 = vld [vmem:[#allocation11 + $0x88] sm:$0xff]  }
 0x39b   :  { %3070 = vmatpush1.bf16.msra.mxu0 %v4608_v25  ;;  %3156 = vmatpush1.bf16.msra.mxu1 %v4611_v26  ;;  %v4695_v25 = vld [vmem:[#allocation11 + $0xd0] sm:$0xff]  }
 0x39c   :  { %3071 = vmatprep.subr.bf16.mxu0 %v4616_v27  ;;  %3157 = vmatprep.subr.bf16.mxu1 %v4619_v28  ;;  %v4696_v26 = vld [vmem:[#allocation11 + $0x10] sm:$0xff]   ;;  %v4698_v28 = vld [vmem:[#allocation11 + $0x58] sm:$0xff]  }
 0x39d   :  { %v4697_v27 = vld [vmem:[#allocation11 + $0x90] sm:$0xff]  }
 0x39f   :  { %3072 = vmatpush1.bf16.msra.mxu0 %v4614_v30  ;;  %3158 = vmatpush1.bf16.msra.mxu1 %v4617_v31  ;;  %v4699_v30 = vld [vmem:[#allocation11 + $0xd8] sm:$0xff]  }
 0x3a0   :  { %3073 = vmatprep.subr.bf16.mxu0 %v4622_v32  ;;  %3159 = vmatprep.subr.bf16.mxu1 %v4625_v33  ;;  %v4700_v31 = vld [vmem:[#allocation11 + $0x18] sm:$0xff]   ;;  %v4702_v32 = vld [vmem:[#allocation11 + $0x60] sm:$0xff]  }
 0x3a1   :  { %v4703_v33 = vld [vmem:[#allocation11 + $0xe0] sm:$0xff]  }
 0x3a3   :  { %3074 = vmatpush1.bf16.msra.mxu0 %v4620_v34  ;;  %3160 = vmatpush1.bf16.msra.mxu1 %v4623_v35  ;;  %v4704_v34 = vld [vmem:[#allocation11 + $0x20] sm:$0xff]  }
 0x3a4   :  { %3075 = vmatprep.subr.bf16.mxu0 %v4628_v36  ;;  %3161 = vmatprep.subr.bf16.mxu1 %v4631_v37  ;;  %v4705_v35 = vld [vmem:[#allocation11 + $0xa0] sm:$0xff]   ;;  %v4706_v36 = vld [vmem:[#allocation11 + $0x68] sm:$0xff]  }
 0x3a5   :  { %v4707_v37 = vld [vmem:[#allocation11 + $0xe8] sm:$0xff]  }
 0x3a7   :  { %3076 = vmatpush1.bf16.msra.mxu0 %v4626_v38  ;;  %3162 = vmatpush1.bf16.msra.mxu1 %v4629_v39  ;;  %v4708_v38 = vld [vmem:[#allocation11 + $0x28] sm:$0xff]  }
 0x3a8   :  { %3077 = vmatprep.subr.bf16.mxu0 %v4634_v40  ;;  %3163 = vmatprep.subr.bf16.mxu1 %v4637_v41  ;;  %v4709_v39 = vld [vmem:[#allocation11 + $0xa8] sm:$0xff]   ;;  %v4710_v40 = vld [vmem:[#allocation11 + $0x70] sm:$0xff]  }
 0x3a9   :  { %v4711_v41 = vld [vmem:[#allocation11 + $0xf0] sm:$0xff]  }
 0x3ab   :  { %3078 = vmatpush1.bf16.msra.mxu0 %v4632_v42  ;;  %3164 = vmatpush1.bf16.msra.mxu1 %v4635_v43  ;;  %v4712_v42 = vld [vmem:[#allocation11 + $0x30] sm:$0xff]  }
 0x3ac   :  { %3079 = vmatprep.subr.bf16.mxu0 %v4640_v44  ;;  %3165 = vmatprep.subr.bf16.mxu1 %v4643_v45  ;;  %v4713_v43 = vld [vmem:[#allocation11 + $0xb0] sm:$0xff]   ;;  %v4714_v44 = vld [vmem:[#allocation11 + $0x78] sm:$0xff]  }
 0x3ad   :  { %v4715_v45 = vld [vmem:[#allocation11 + $0xf8] sm:$0xff]  }
 0x3af   :  { %3080 = vmatpush1.bf16.msra.mxu0 %v4638_v46  ;;  %3166 = vmatpush1.bf16.msra.mxu1 %v4641_v47  ;;  %v4716_v46 = vld [vmem:[#allocation11 + $0x38] sm:$0xff]  }
 0x3b0   :  { %3081 = vmatprep.subr.bf16.mxu0 %v4646_v48  ;;  %3167 = vmatprep.subr.bf16.mxu1 %v4649_v49  ;;  %v4717_v47 = vld [vmem:[#allocation11 + $0xb8] sm:$0xff]   ;;  %v2358_v48 = vld [vmem:[%s5117_s8] sm:$0xf] }
 0x3b1   :  { %v2363_v49 = vrot.slane %v2358_v48, %v5046_v15 }
 0x3b3   :  { %3082 = vmatpush1.bf16.msra.mxu0 %v4644_v29  ;;  %3168 = vmatpush1.bf16.msra.mxu1 %v4647_v50  ;;  %v2371_v29 = vrot.slane %v2358_v48, %v5050_v17  ;;  %v2367_v50 = vrot.slane %v2358_v48, %v5048_v16 }
 0x3b4   :  { %3083 = vmatprep.subr.bf16.mxu0 %v4652_v51  ;;  %3169 = vmatprep.subr.bf16.mxu1 %v4655_v52  ;;  %v2375_v51 = vrot.slane %v2358_v48, %v5052_v18 }
 0x3b7   :  { %3084 = vmatpush1.bf16.msra.mxu0 %v4650_v54  ;;  %3170 = vmatpush1.bf16.msra.mxu1 %v4653_v55 }
 0x3b8   :  { %3085 = vmatprep.subr.bf16.mxu0 %v4658_v56  ;;  %3171 = vmatprep.subr.bf16.mxu1 %v4661_v57 }
 0x3bb   :  { %3086 = vmatpush1.bf16.msra.mxu0 %v4656_v58  ;;  %3172 = vmatpush1.bf16.msra.mxu1 %v4659_v59 }
 0x3bc   :  { %3087 = vmatprep.subr.bf16.mxu0 %v4664_v60  ;;  %3173 = vmatprep.subr.bf16.mxu1 %v4667_v61 }
 0x3bf   :  { %3088 = vmatpush1.bf16.msra.mxu0 %v4662_v62  ;;  %3174 = vmatpush1.bf16.msra.mxu1 %v4665_v63 }
 0x3c0   :  { %3089 = vmatprep.subr.bf16.mxu0 %v4670_v0  ;;  %3175 = vmatprep.subr.bf16.mxu1 %v4673_v1 }
 0x3c3   :  { %3090 = vmatpush1.bf16.msra.mxu0 %v4668_v2  ;;  %3176 = vmatpush1.bf16.msra.mxu1 %v4671_v3 }
 0x3c4   :  { %3091 = vmatprep.subr.bf16.mxu0 %v4676_v4  ;;  %3177 = vmatprep.subr.bf16.mxu1 %v4679_v53 }
 0x3c7   :  { %3092 = vmatpush1.bf16.msra.mxu0 %v4674_v5  ;;  %3178 = vmatpush1.bf16.msra.mxu1 %v4677_v7 }
 0x3c8   :  { %3093 = vmatprep.subr.bf16.mxu0 %v4682_v8  ;;  %3179 = vmatprep.subr.bf16.mxu1 %v4685_v9 }
 0x3cb   :  { %3094 = vmatpush1.bf16.msra.mxu0 %v4680_v10  ;;  %3180 = vmatpush1.bf16.msra.mxu1 %v4683_v11 }
 0x3cc   :  { %3998 = vmatprep.subr.bf16.mxu0 %v4686_v12  ;;  %4020 = vmatprep.subr.bf16.mxu1 %v4687_v13 }
 0x3ce   :  { %3096 = vmatmul.mubr.bf16.vlgmr.msra.gmra.mrb[12].mxu0 %v5080_v6  ;;  %3182 = vmatmul.mubr.bf16.vlgmr.msra.gmra.mrb[12].mxu1 %v5080_v6  ;;  %v4701_v6 = vld [vmem:[#allocation11 + $0x98] sm:$0xff]  }
 0x3cf   :  { %3999 = vmatpush3.bf16.msra.mxu0 %v4688_v14  ;;  %4021 = vmatpush3.bf16.msra.mxu1 %v4689_v19  ;;  %v3965_v19 = vld [vmem:[%s5119_s10] ss:$0 sm:$0xff]  ;;  %s4850_s10 = scalar_lea.vmem %s3559_s3, 256 }
 0x3d0   :  { %4000 = vmatprep.subr.bf16.mxu0 %v4690_v20  ;;  %4022 = vmatprep.subr.bf16.mxu1 %v4691_v21  ;;  %p4851_p6 = scmp.ne.s32.totalorder %s3559_s3, %s4850_s10  ;;  %p4856_p8 = scmp.lt.s32.totalorder %s4850_s10, %s4850_s10 }
 0x3d2   :  { %p4857_p9 = por %p4856_p8, %p4855_p7 }
 0x3d3   :  { %4001 = vmatpush3.bf16.msra.mxu0 %v4692_v22  ;;  %4023 = vmatpush3.bf16.msra.mxu1 %v4693_v23 }
 0x3d4   :  { %4002 = vmatprep.subr.bf16.mxu0 %v4694_v24  ;;  %4024 = vmatprep.subr.bf16.mxu1 %v4695_v25  ;;  %p4858_p10 = pnand %p4857_p9, %p4851_p6 }
 0x3d7   :  { %4003 = vmatpush3.bf16.msra.mxu0 %v4696_v26  ;;  %4025 = vmatpush3.bf16.msra.mxu1 %v4697_v27 }
 0x3d8   :  { %4004 = vmatprep.subr.bf16.mxu0 %v4698_v28  ;;  %4026 = vmatprep.subr.bf16.mxu1 %v4699_v30 }
 0x3db   :  { %4005 = vmatpush3.bf16.msra.mxu0 %v4700_v31  ;;  %4027 = vmatpush3.bf16.msra.mxu1 %v4701_v6 }
 0x3dc   :  { %4006 = vmatprep.subr.bf16.mxu0 %v4702_v32  ;;  %4028 = vmatprep.subr.bf16.mxu1 %v4703_v33 }
 0x3df   :  { %4007 = vmatpush3.bf16.msra.mxu0 %v4704_v34  ;;  %4029 = vmatpush3.bf16.msra.mxu1 %v4705_v35 }
 0x3e0   :  { %4008 = vmatprep.subr.bf16.mxu0 %v4706_v36  ;;  %4030 = vmatprep.subr.bf16.mxu1 %v4707_v37 }
 0x3e3   :  { %4009 = vmatpush3.bf16.msra.mxu0 %v4708_v38  ;;  %4031 = vmatpush3.bf16.msra.mxu1 %v4709_v39 }
 0x3e4   :  { %4010 = vmatprep.subr.bf16.mxu0 %v4710_v40  ;;  %4032 = vmatprep.subr.bf16.mxu1 %v4711_v41 }
 0x3e7   :  { %4011 = vmatpush3.bf16.msra.mxu0 %v4712_v42  ;;  %4033 = vmatpush3.bf16.msra.mxu1 %v4713_v43 }
 0x3e8   :  { %4012 = vmatprep.subr.bf16.mxu0 %v4714_v44  ;;  %4034 = vmatprep.subr.bf16.mxu1 %v4715_v45 }
 0x3eb   :  { %4013 = vmatpush3.bf16.msra.mxu0 %v4716_v46  ;;  %4035 = vmatpush3.bf16.msra.mxu1 %v4717_v47 }
 0x4a1   :  { %v3097_v52 = vpop.f32.mrb[12].mxu0  ;;  %v3183_v54 = vpop.f32.mrb[12].mxu1 }
 0x4a2   :  { %v4058_v55 = vadd.f32 %v3097_v52, %v2363_v49  ;;  %v4062_v56 = vadd.f32 %v3183_v54, %v2371_v29  ;;  %v3099_v57 = vpop.f32.mrb[13].mxu0  ;;  %v3185_v58 = vpop.f32.mrb[13].mxu1 }
 0x4a3   :  { %v4059_v59 = vadd.f32 %v3099_v57, %v2367_v50  ;;  %v4063_v60 = vadd.f32 %v3185_v58, %v2375_v51  ;;  %v3101_v61 = vpop.f32.mrb[14].mxu0  ;;  %v3187_v62 = vpop.f32.mrb[14].mxu1 }
 0x4a4   :  { %v4060_v63 = vadd.f32 %v3101_v61, %v2363_v49  ;;  %v4064_v0 = vadd.f32 %v3187_v62, %v2371_v29  ;;  %v3103_v1 = vpop.f32.mrb[15].mxu0  ;;  %v3189_v15 = vpop.f32.mrb[15].mxu1  ;;  %v3192_v3 = vmax.f32 %v4058_v55, 0.0  ;;  %v3194_v16 = vmax.f32 %v4062_v56, 0.0 }
 0x4a5   :  { %v4061_v2 = vadd.f32 %v3103_v1, %v2367_v50  ;;  %v4065_v17 = vadd.f32 %v3189_v15, %v2375_v51  ;;  %v3193_v53 = vmax.f32 %v4059_v59, 0.0  ;;  %v3195_v5 = vmax.f32 %v4063_v60, 0.0 }
 0x4a6   :  { %v3196_v4 = vmax.f32 %v4060_v63, 0.0  ;;  %v3198_v18 = vmax.f32 %v4064_v0, 0.0 }
 0x4a7   :  { %v3197_v7 = vmax.f32 %v4061_v2, 0.0  ;;  %v3199_v8 = vmax.f32 %v4065_v17, 0.0 }
 0x4a8   :  { %v3200_v9 = vpack.c.bf16 %v3196_v4, %v3192_v3  ;;  %v3202_v10 = vpack.c.bf16 %v3198_v18, %v3194_v16 }
 0x4a9   :  { %v3201_v11 = vpack.c.bf16 %v3197_v7, %v3193_v53  ;;  %v3203_v12 = vpack.c.bf16 %v3199_v8, %v3195_v5 }
 0x4ab   :  { %3499 = vmatprep.mubr.bf16.mxu0 %v3201_v11  ;;  %3540 = vmatprep.mubr.bf16.mxu1 %v3203_v12 }
 0x4ac   :  { %3500 = vmatmul.mubr.bf16.vlgmr.msra.gmra.mrb[16].mxu0 %v3200_v9  ;;  %3541 = vmatmul.mubr.bf16.vlgmr.msra.gmra.mrb[16].mxu1 %v3202_v10 }
 0x57f   :  { %v4014_v13 = vpop.f32.mrb[16].mxu0  ;;  %v4036_v14 = vpop.f32.mrb[16].mxu1 }
 0x580   :  { %v4015_v20 = vpop.f32.mrb[17].mxu0  ;;  %v4037_v21 = vpop.f32.mrb[17].mxu1 }
 0x581   :  { %v4016_v22 = vadd.f32 %v4015_v20, %v4014_v13  ;;  %v4038_v23 = vadd.f32 %v4037_v21, %v4036_v14  ;;  %v4017_v24 = vpop.f32.mrb[18].mxu0  ;;  %v4039_v25 = vpop.f32.mrb[18].mxu1 }
 0x582   :  { %v4018_v26 = vpop.f32.mrb[19].mxu0  ;;  %v4040_v27 = vpop.f32.mrb[19].mxu1 }
 0x583   :  { %v3502_v28 = vadd.f32 %v4016_v22, %v3965_v19  ;;  %v4019_v30 = vadd.f32 %v4018_v26, %v4017_v24  ;;  %v4041_v31 = vadd.f32 %v4040_v27, %v4039_v25 }
 0x585   :  { %v3543_v6 = vadd.f32 %v4038_v23, %v3502_v28  ;;  %v3505_v32 = vadd.f32 %v4019_v30, %v3965_v19 }
 0x587   :  { %v3549_v33 = vmax.f32 %v3543_v6, 0.0  ;;  %v3546_v34 = vadd.f32 %v4041_v31, %v3505_v32 }
 0x589   :  { %3551 = vst [vmem:[#allocation13] sm:$0xff] %v3549_v33  ;;  %v3550_v35 = vmax.f32 %v3546_v34, 0.0 }
 0x58b   :  { %3552 = vst [vmem:[#allocation13 + $0x8] sm:$0xff] %v3550_v35 }
 0x58c   :  { %4861 = shalt.err (!%p4858_p10)
}
 0x58d   :  { %s4862_s26 = scalar_lea.hbm %s5120_s11, 256 }
 0x58e   :  { %p4863_p11 = scmp.ne.s32.totalorder %s5120_s11, %s4862_s26  ;;  %p4866_p12 = scmp.lt.u32.totalorder %s4862_s26, %s5120_s11 }
 0x590   :  { %p4868_p13 = pnand %p4866_p12, %p4863_p11 }
 0x592   :  { %4871 = shalt.err (!%p4868_p13)
}
 0x593   :  { %3564 = dma.vmem_to_hbm [thread:$0]  %s3559_s3, 256, %s5120_s11, [#allocation4], %s4887_s5, %s4887_s5, %s4888_s13  }
 0x594   :  { %4880 = dma.done.wait [#allocation4], 256  }
 0x595   :  { %4881 = vsyncadd [#allocation4], 4294967040 }
 0x596   :  { %3568 = vsyncpa [#allocation3], 1 }
 0x597   :  { %3569 = vsyncpa [#allocation6], 1 }
 0x598   :  { %3570 = vsyncpa [#allocation9], 1 }
 0x599   :  { %3571 = vsyncpa [#allocation12], 1 }
 0x59a   :  { %3572 = vsyncpa [#allocation4], 1 }

</bundles_post_ra>
